<compile_context>
chip_gen: v6e
topology: v6e:2x2x1
jax: 0.10.0
libtpu: 0.0.40
codegen_flags: <defaults>
</compile_context>

<pallas_src>
import math
import jax
import jax.numpy as jnp
import numpy as np
from jax import lax
from jax.experimental import pallas as pl
from jax.experimental.pallas import tpu as pltpu


def _round_up(n, m):
    return ((n + m - 1) // m) * m


def _bandit_lstm_kernel(
    xproj_ref,  # (T*Bp, 4*Hp) f32   x @ W_ih^T + b, gate order (i, f, o, g)
    whh_ref,    # (Hp, 4*Hp)   bf16  W_hh^T, gate order (i, f, o, g)
    wh_ref,     # (Hp, HC)     bf16  fused [policy | value | 0-pad] head weight
    bh_ref,     # (1, HC)      f32   fused head bias
    h0_ref,     # (Bp, Hp)     f32
    c0_ref,     # (Bp, Hp)     f32
    heads_ref,  # (T*Bp, HC)   f32   out: [policy logits | value | pad]
    hT_ref,     # (Bp, Hp)     f32   out
    cT_ref,     # (Bp, Hp)     f32   out
    hall_sc,    # (T*Bp, Hp)   f32   scratch: all hidden states (time-major)
):
    Bp, Hp = h0_ref.shape
    T = xproj_ref.shape[0] // Bp

    whh = whh_ref[...]  # bf16, held in vregs across the unrolled loop

    # ---- serial recurrence: only h @ W_hh (bf16 MXU) + f32 gate math ----
    def step(t, carry):
        h, c = carry                                        # f32 (Bp, Hp)
        row = pl.multiple_of(t * Bp, 8)                     # sublane-tile aligned
        gates = xproj_ref[pl.ds(row, Bp), :] + jnp.dot(
            h.astype(jnp.bfloat16), whh, preferred_element_type=jnp.float32
        )                                                   # (Bp, 4Hp) f32
        sig = jax.nn.sigmoid(gates[:, : 3 * Hp])            # i, f, o: 3 lane tiles
        i_g = sig[:, :Hp]
        f_g = sig[:, Hp : 2 * Hp]
        o_g = sig[:, 2 * Hp : 3 * Hp]
        g_g = jnp.tanh(gates[:, 3 * Hp :])                  # g: 1 lane tile
        c_new = f_g * c + i_g * g_g
        h_new = o_g * jnp.tanh(c_new)
        hall_sc[pl.ds(row, Bp), :] = h_new                  # (8,128)-tile store
        return (h_new, c_new)

    # Full unroll only while T is small/static; partial unroll bounds code size
    # and vreg live ranges at production T while keeping LLO visibility.
    hT, cT = lax.fori_loop(
        0, T, step, (h0_ref[...], c0_ref[...]), unroll=True if T <= 16 else 8
    )
    hT_ref[...] = hT
    cT_ref[...] = cT

    # ---- fused policy+value heads: ONE bf16 matmul, ONE lane-dense store ----
    heads_ref[...] = (
        jnp.dot(
            hall_sc[...].astype(jnp.bfloat16),
            wh_ref[...],
            preferred_element_type=jnp.float32,
        )
        + bh_ref[...]
    )


def prepare_params(params):
    """One-time weight preparation (hoisted out of the per-call forward path).

    PyTorch LSTM gate order (i, f, g, o) is permuted to (i, f, o, g) so sigmoid
    runs on one contiguous 3-tile slice and tanh on the last tile; hidden dim is
    zero-padded to a multiple of 128; policy+value heads are fused and padded to
    a lane-dense 128-wide output; MXU operands are cast to bf16.
    """
    H = params["w_hh"].shape[1]
    D = params["w_ih"].shape[1]
    A = params["w_policy"].shape[0]
    Hp = _round_up(max(H, 128), 128)
    HC = _round_up(max(A + 1, 128), 128)
    torch_order = (0, 1, 3, 2)  # kernel gates (i, f, o, g) <- torch blocks

    def pad_gate_rows(w, ncols_out, ncols_in):
        out = jnp.zeros((4 * Hp, ncols_out), jnp.float32)
        for k, tg in enumerate(torch_order):
            out = out.at[k * Hp : k * Hp + H, :ncols_in].set(
                w[tg * H : (tg + 1) * H, :ncols_in]
            )
        return out

    wih_p = pad_gate_rows(params["w_ih"], D, D)          # (4Hp, D)
    whh_p = pad_gate_rows(params["w_hh"], Hp, H)         # (4Hp, Hp)

    b = params["b_ih"] + params["b_hh"]
    b_p = jnp.zeros((4 * Hp,), jnp.float32)
    for k, tg in enumerate(torch_order):
        b_p = b_p.at[k * Hp : k * Hp + H].set(b[tg * H : (tg + 1) * H])

    wh = jnp.zeros((Hp, HC), jnp.float32)
    wh = wh.at[:H, :A].set(params["w_policy"].T)
    wh = wh.at[:H, A].set(params["w_value"][0])
    bh = jnp.zeros((1, HC), jnp.float32)
    bh = bh.at[0, :A].set(params["b_policy"])
    bh = bh.at[0, A].set(params["b_value"][0])

    return {
        "wih_t": wih_p.T,                           # (D, 4Hp) f32 (wrapper GEMM)
        "b": b_p.reshape(1, 4 * Hp),                # (1, 4Hp) f32
        "whh_t": whh_p.T.astype(jnp.bfloat16),      # (Hp, 4Hp) bf16 (MXU operand)
        "wh": wh.astype(jnp.bfloat16),              # (Hp, HC)  bf16 (MXU operand)
        "bh": bh,                                   # (1, HC)   f32
        "H": H, "Hp": Hp, "A": A, "D": D, "HC": HC,
    }


def bandit_lstm_forward(x, prep, hidden_state=None):
    """Pallas forward pass. Returns (policy_logits, value, (h_n, c_n))."""
    B, T, D = x.shape
    H, Hp, A, HC = prep["H"], prep["Hp"], prep["A"], prep["HC"]
    Bp = _round_up(B, 8)

    if hidden_state is None:
        h0 = jnp.zeros((Bp, Hp), jnp.float32)
        c0 = jnp.zeros((Bp, Hp), jnp.float32)
    else:
        h_in, c_in = hidden_state
        h0 = jnp.zeros((Bp, Hp), jnp.float32).at[:B, :H].set(
            h_in.reshape(B, H).astype(jnp.float32))
        c0 = jnp.zeros((Bp, Hp), jnp.float32).at[:B, :H].set(
            c_in.reshape(B, H).astype(jnp.float32))

    # Per-call layout plumbing: time-major, batch padded to one sublane tile.
    x_tm = jnp.swapaxes(x.astype(jnp.float32), 0, 1)        # (T, B, D)
    x_tm = jnp.pad(x_tm, ((0, 0), (0, Bp - B), (0, 0)))
    x_flat = x_tm.reshape(T * Bp, D)

    # Input projection hoisted out of the recurrence: one well-shaped XLA GEMM.
    xproj = x_flat @ prep["wih_t"] + prep["b"]              # (T*Bp, 4Hp) f32

    vmem = pl.BlockSpec(memory_space=pltpu.MemorySpace.VMEM)

    flops = int(2 * T * Bp * Hp * (4 * Hp) + 2 * T * Bp * Hp * HC)
    transc = int(T * Bp * (4 * Hp + Hp))
    bytes_acc = int(
        xproj.size * 4 + prep["whh_t"].size * 2 + prep["wh"].size * 2
        + prep["bh"].size * 4 + (h0.size + c0.size) * 4
        + T * Bp * HC * 4 + 2 * Bp * Hp * 4
    )

    heads, h_n, c_n = pl.pallas_call(
        _bandit_lstm_kernel,
        out_shape=(
            jax.ShapeDtypeStruct((T * Bp, HC), jnp.float32),
            jax.ShapeDtypeStruct((Bp, Hp), jnp.float32),
            jax.ShapeDtypeStruct((Bp, Hp), jnp.float32),
        ),
        in_specs=[vmem] * 6,
        out_specs=(vmem, vmem, vmem),
        scratch_shapes=[pltpu.VMEM((T * Bp, Hp), jnp.float32)],
        compiler_params=pltpu.CompilerParams(vmem_limit_bytes=32 * 1024 * 1024),
        cost_estimate=pl.CostEstimate(
            flops=flops, transcendentals=transc, bytes_accessed=bytes_acc),
    )(xproj, prep["whh_t"], prep["wh"], prep["bh"], h0, c0)

    heads_bt = jnp.swapaxes(heads.reshape(T, Bp, HC), 0, 1)[:B]   # (B, T, HC)
    pol = heads_bt[..., :A]
    val = heads_bt[..., A]
    # PyTorch LSTM returns hidden state as (num_layers, B, H).
    return pol, val, (h_n[:B, :H][None], c_n[:B, :H][None])


def init_params(key, input_size, hidden_size, num_actions):
    """Deterministic init mirroring BanditLSTMModel._initialize_weights."""
    k1, k2, k3, k4 = jax.random.split(key, 4)

    def xavier_uniform(k, shape):
        fan_out, fan_in = shape
        bound = math.sqrt(6.0 / (fan_in + fan_out))
        return jax.random.uniform(k, shape, jnp.float32, -bound, bound)

    H = hidden_size
    return {
        "w_ih": xavier_uniform(k1, (4 * H, input_size)),
        "w_hh": xavier_uniform(k2, (4 * H, H)),
        "b_ih": jnp.zeros((4 * H,), jnp.float32),
        "b_hh": jnp.zeros((4 * H,), jnp.float32),
        "w_policy": jax.random.normal(k3, (num_actions, H), jnp.float32) / math.sqrt(H),
        "b_policy": jnp.zeros((num_actions,), jnp.float32),
        "w_value": jax.random.normal(k4, (1, H), jnp.float32) / math.sqrt(H),
        "b_value": jnp.zeros((1,), jnp.float32),
    }


def _reference_forward(x, params):
    """Pure-JAX f32 reference (same math as torch.nn.LSTM + heads)."""
    B, T, D = x.shape
    H = params["w_hh"].shape[1]
    hp = jax.lax.Precision.HIGHEST
    wih_t = params["w_ih"].T
    whh_t = params["w_hh"].T
    b = params["b_ih"] + params["b_hh"]

    def step(carry, x_t):
        h, c = carry
        gates = (jnp.dot(x_t, wih_t, precision=hp)
                 + jnp.dot(h, whh_t, precision=hp) + b)
        i = jax.nn.sigmoid(gates[:, :H])
        f = jax.nn.sigmoid(gates[:, H:2 * H])
        g = jnp.tanh(gates[:, 2 * H:3 * H])
        o = jax.nn.sigmoid(gates[:, 3 * H:])
        c = f * c + i * g
        h = o * jnp.tanh(c)
        return (h, c), h

    h0 = jnp.zeros((B, H), jnp.float32)
    c0 = jnp.zeros((B, H), jnp.float32)
    (hT, cT), hs = jax.lax.scan(step, (h0, c0), jnp.swapaxes(x, 0, 1))
    rnn_out = jnp.swapaxes(hs, 0, 1)                                # (B, T, H)
    pol = jnp.dot(rnn_out, params["w_policy"].T, precision=hp) + params["b_policy"]
    val = (jnp.dot(rnn_out, params["w_value"].T, precision=hp) + params["b_value"])[..., 0]
    return pol, val, (hT[None], cT[None])


if __name__ == "__main__":
    # 2-armed bandit: input_size = num_actions + 1(reward) = 3, hidden = 32,
    # batch = 2, seq = 8.
    B, T, D, H, A = 2, 8, 3, 32, 2

    key = jax.random.PRNGKey(0)
    kp, kx = jax.random.split(key)
    params = init_params(kp, D, H, A)
    prep = prepare_params(params)          # one-time weight prep (hoisted)
    x = jax.random.normal(kx, (B, T, D), jnp.float32)

    fwd = jax.jit(lambda xx: bandit_lstm_forward(xx, prep))
    pol, val, (h_n, c_n) = fwd(x)
    jax.block_until_ready((pol, val, h_n, c_n))

    # Correctness check against a pure-JAX f32 LSTM reference (bf16 MXU
    # operands in the kernel -> loosened tolerance).
    pol_r, val_r, (h_r, c_r) = _reference_forward(x, params)
    np.testing.assert_allclose(np.asarray(pol), np.asarray(pol_r), atol=2e-2, rtol=2e-2)
    np.testing.assert_allclose(np.asarray(val), np.asarray(val_r), atol=2e-2, rtol=2e-2)
    np.testing.assert_allclose(np.asarray(h_n), np.asarray(h_r), atol=2e-2, rtol=2e-2)
    np.testing.assert_allclose(np.asarray(c_n), np.asarray(c_r), atol=2e-2, rtol=2e-2)

    assert pol.shape == (B, T, A) and val.shape == (B, T)
    assert h_n.shape == (1, B, H) and c_n.shape == (1, B, H)

    print("KERNEL_OK")
</pallas_src>

<mosaic_0001>
module attributes {stable_mosaic.version = 11 : i64} {
  func.func @_bandit_lstm_kernel(%arg0: memref<64x512xf32, #tpu.memory_space<vmem>>, %arg1: memref<128x512xbf16, #tpu.memory_space<vmem>>, %arg2: memref<128x128xbf16, #tpu.memory_space<vmem>>, %arg3: memref<1x128xf32, #tpu.memory_space<vmem>>, %arg4: memref<8x128xf32, #tpu.memory_space<vmem>>, %arg5: memref<8x128xf32, #tpu.memory_space<vmem>>, %arg6: memref<64x128xf32, #tpu.memory_space<vmem>>, %arg7: memref<8x128xf32, #tpu.memory_space<vmem>>, %arg8: memref<8x128xf32, #tpu.memory_space<vmem>>, %arg9: memref<64x128xf32, #tpu.memory_space<vmem>>) attributes {dimension_semantics = [], scalar_prefetch = 0 : i64, scratch_operands = 1 : i64, tpu.core_type = #tpu.core_type<tc>} {
    %c0 = arith.constant 0 : index
    %c0_0 = arith.constant 0 : index
    %0 = vector.load %arg1[%c0, %c0_0] : memref<128x512xbf16, #tpu.memory_space<vmem>>, vector<128x512xbf16>
    %c0_1 = arith.constant 0 : index
    %c0_2 = arith.constant 0 : index
    %1 = vector.load %arg4[%c0_1, %c0_2] : memref<8x128xf32, #tpu.memory_space<vmem>>, vector<8x128xf32>
    %c0_3 = arith.constant 0 : index
    %c0_4 = arith.constant 0 : index
    %2 = vector.load %arg5[%c0_3, %c0_4] : memref<8x128xf32, #tpu.memory_space<vmem>>, vector<8x128xf32>
    %c0_i32 = arith.constant 0 : i32
    %c8_i32 = arith.constant 8 : i32
    %3 = arith.muli %c0_i32, %c8_i32 : i32
    %4 = tpu.assume_multiple %3, 8 : i32
    %5 = arith.index_cast %4 : i32 to index
    %c0_5 = arith.constant 0 : index
    %6 = vector.load %arg0[%5, %c0_5] : memref<64x512xf32, #tpu.memory_space<vmem>>, vector<8x512xf32>
    %7 = arith.truncf %1 : vector<8x128xf32> to vector<8x128xbf16>
    %cst = arith.constant dense<0.000000e+00> : vector<8x512xf32>
    %8 = tpu.matmul %7, %0, %cst {dimension_numbers = #tpu.dot_dimension_numbers<[1], [0], [0], [1], [0, 0, 1, 1], [], []>} : vector<8x128xbf16>, vector<128x512xbf16>, vector<8x512xf32> -> vector<8x512xf32>
    %9 = arith.addf %6, %8 : vector<8x512xf32>
    %10 = vector.extract_strided_slice %9 {offsets = [0, 0], sizes = [8, 384], strides = [1, 1]} : vector<8x512xf32> to vector<8x384xf32>
    %11 = arith.negf %10 : vector<8x384xf32>
    %12 = math.exp %11 : vector<8x384xf32>
    %cst_6 = arith.constant 1.000000e+00 : f32
    %13 = vector.broadcast %cst_6 : f32 to vector<8x384xf32>
    %14 = arith.addf %13, %12 : vector<8x384xf32>
    %15 = arith.divf %13, %14 : vector<8x384xf32>
    %16 = vector.extract_strided_slice %15 {offsets = [0, 0], sizes = [8, 128], strides = [1, 1]} : vector<8x384xf32> to vector<8x128xf32>
    %17 = vector.extract_strided_slice %15 {offsets = [0, 128], sizes = [8, 128], strides = [1, 1]} : vector<8x384xf32> to vector<8x128xf32>
    %18 = vector.extract_strided_slice %15 {offsets = [0, 256], sizes = [8, 128], strides = [1, 1]} : vector<8x384xf32> to vector<8x128xf32>
    %19 = vector.extract_strided_slice %9 {offsets = [0, 384], sizes = [8, 128], strides = [1, 1]} : vector<8x512xf32> to vector<8x128xf32>
    %20 = math.tanh %19 : vector<8x128xf32>
    %21 = arith.mulf %17, %2 : vector<8x128xf32>
    %22 = arith.mulf %16, %20 : vector<8x128xf32>
    %23 = arith.addf %21, %22 : vector<8x128xf32>
    %24 = math.tanh %23 : vector<8x128xf32>
    %25 = arith.mulf %18, %24 : vector<8x128xf32>
    %26 = arith.index_cast %4 : i32 to index
    %c0_7 = arith.constant 0 : index
    %27 = vector.load %arg9[%26, %c0_7] : memref<64x128xf32, #tpu.memory_space<vmem>>, vector<8x128xf32>
    tpu.vector_store %arg9[%26, %c0_7], %25 {strides = array<i32>} : memref<64x128xf32, #tpu.memory_space<vmem>>, vector<8x128xf32>,
    %c1_i32 = arith.constant 1 : i32
    %c8_i32_8 = arith.constant 8 : i32
    %28 = arith.muli %c1_i32, %c8_i32_8 : i32
    %29 = tpu.assume_multiple %28, 8 : i32
    %30 = arith.index_cast %29 : i32 to index
    %c0_9 = arith.constant 0 : index
    %31 = vector.load %arg0[%30, %c0_9] : memref<64x512xf32, #tpu.memory_space<vmem>>, vector<8x512xf32>
    %32 = arith.truncf %25 : vector<8x128xf32> to vector<8x128xbf16>
    %cst_10 = arith.constant dense<0.000000e+00> : vector<8x512xf32>
    %33 = tpu.matmul %32, %0, %cst_10 {dimension_numbers = #tpu.dot_dimension_numbers<[1], [0], [0], [1], [0, 0, 1, 1], [], []>} : vector<8x128xbf16>, vector<128x512xbf16>, vector<8x512xf32> -> vector<8x512xf32>
    %34 = arith.addf %31, %33 : vector<8x512xf32>
    %35 = vector.extract_strided_slice %34 {offsets = [0, 0], sizes = [8, 384], strides = [1, 1]} : vector<8x512xf32> to vector<8x384xf32>
    %36 = arith.negf %35 : vector<8x384xf32>
    %37 = math.exp %36 : vector<8x384xf32>
    %cst_11 = arith.constant 1.000000e+00 : f32
    %38 = vector.broadcast %cst_11 : f32 to vector<8x384xf32>
    %39 = arith.addf %38, %37 : vector<8x384xf32>
    %40 = arith.divf %38, %39 : vector<8x384xf32>
    %41 = vector.extract_strided_slice %40 {offsets = [0, 0], sizes = [8, 128], strides = [1, 1]} : vector<8x384xf32> to vector<8x128xf32>
    %42 = vector.extract_strided_slice %40 {offsets = [0, 128], sizes = [8, 128], strides = [1, 1]} : vector<8x384xf32> to vector<8x128xf32>
    %43 = vector.extract_strided_slice %40 {offsets = [0, 256], sizes = [8, 128], strides = [1, 1]} : vector<8x384xf32> to vector<8x128xf32>
    %44 = vector.extract_strided_slice %34 {offsets = [0, 384], sizes = [8, 128], strides = [1, 1]} : vector<8x512xf32> to vector<8x128xf32>
    %45 = math.tanh %44 : vector<8x128xf32>
    %46 = arith.mulf %42, %23 : vector<8x128xf32>
    %47 = arith.mulf %41, %45 : vector<8x128xf32>
    %48 = arith.addf %46, %47 : vector<8x128xf32>
    %49 = math.tanh %48 : vector<8x128xf32>
    %50 = arith.mulf %43, %49 : vector<8x128xf32>
    %51 = arith.index_cast %29 : i32 to index
    %c0_12 = arith.constant 0 : index
    %52 = vector.load %arg9[%51, %c0_12] : memref<64x128xf32, #tpu.memory_space<vmem>>, vector<8x128xf32>
    tpu.vector_store %arg9[%51, %c0_12], %50 {strides = array<i32>} : memref<64x128xf32, #tpu.memory_space<vmem>>, vector<8x128xf32>,
    %c2_i32 = arith.constant 2 : i32
    %c8_i32_13 = arith.constant 8 : i32
    %53 = arith.muli %c2_i32, %c8_i32_13 : i32
    %54 = tpu.assume_multiple %53, 8 : i32
    %55 = arith.index_cast %54 : i32 to index
    %c0_14 = arith.constant 0 : index
    %56 = vector.load %arg0[%55, %c0_14] : memref<64x512xf32, #tpu.memory_space<vmem>>, vector<8x512xf32>
    %57 = arith.truncf %50 : vector<8x128xf32> to vector<8x128xbf16>
    %cst_15 = arith.constant dense<0.000000e+00> : vector<8x512xf32>
    %58 = tpu.matmul %57, %0, %cst_15 {dimension_numbers = #tpu.dot_dimension_numbers<[1], [0], [0], [1], [0, 0, 1, 1], [], []>} : vector<8x128xbf16>, vector<128x512xbf16>, vector<8x512xf32> -> vector<8x512xf32>
    %59 = arith.addf %56, %58 : vector<8x512xf32>
    %60 = vector.extract_strided_slice %59 {offsets = [0, 0], sizes = [8, 384], strides = [1, 1]} : vector<8x512xf32> to vector<8x384xf32>
    %61 = arith.negf %60 : vector<8x384xf32>
    %62 = math.exp %61 : vector<8x384xf32>
    %cst_16 = arith.constant 1.000000e+00 : f32
    %63 = vector.broadcast %cst_16 : f32 to vector<8x384xf32>
    %64 = arith.addf %63, %62 : vector<8x384xf32>
    %65 = arith.divf %63, %64 : vector<8x384xf32>
    %66 = vector.extract_strided_slice %65 {offsets = [0, 0], sizes = [8, 128], strides = [1, 1]} : vector<8x384xf32> to vector<8x128xf32>
    %67 = vector.extract_strided_slice %65 {offsets = [0, 128], sizes = [8, 128], strides = [1, 1]} : vector<8x384xf32> to vector<8x128xf32>
    %68 = vector.extract_strided_slice %65 {offsets = [0, 256], sizes = [8, 128], strides = [1, 1]} : vector<8x384xf32> to vector<8x128xf32>
    %69 = vector.extract_strided_slice %59 {offsets = [0, 384], sizes = [8, 128], strides = [1, 1]} : vector<8x512xf32> to vector<8x128xf32>
    %70 = math.tanh %69 : vector<8x128xf32>
    %71 = arith.mulf %67, %48 : vector<8x128xf32>
    %72 = arith.mulf %66, %70 : vector<8x128xf32>
    %73 = arith.addf %71, %72 : vector<8x128xf32>
    %74 = math.tanh %73 : vector<8x128xf32>
    %75 = arith.mulf %68, %74 : vector<8x128xf32>
    %76 = arith.index_cast %54 : i32 to index
    %c0_17 = arith.constant 0 : index
    %77 = vector.load %arg9[%76, %c0_17] : memref<64x128xf32, #tpu.memory_space<vmem>>, vector<8x128xf32>
    tpu.vector_store %arg9[%76, %c0_17], %75 {strides = array<i32>} : memref<64x128xf32, #tpu.memory_space<vmem>>, vector<8x128xf32>,
    %c3_i32 = arith.constant 3 : i32
    %c8_i32_18 = arith.constant 8 : i32
    %78 = arith.muli %c3_i32, %c8_i32_18 : i32
    %79 = tpu.assume_multiple %78, 8 : i32
    %80 = arith.index_cast %79 : i32 to index
    %c0_19 = arith.constant 0 : index
    %81 = vector.load %arg0[%80, %c0_19] : memref<64x512xf32, #tpu.memory_space<vmem>>, vector<8x512xf32>
    %82 = arith.truncf %75 : vector<8x128xf32> to vector<8x128xbf16>
    %cst_20 = arith.constant dense<0.000000e+00> : vector<8x512xf32>
    %83 = tpu.matmul %82, %0, %cst_20 {dimension_numbers = #tpu.dot_dimension_numbers<[1], [0], [0], [1], [0, 0, 1, 1], [], []>} : vector<8x128xbf16>, vector<128x512xbf16>, vector<8x512xf32> -> vector<8x512xf32>
    %84 = arith.addf %81, %83 : vector<8x512xf32>
    %85 = vector.extract_strided_slice %84 {offsets = [0, 0], sizes = [8, 384], strides = [1, 1]} : vector<8x512xf32> to vector<8x384xf32>
    %86 = arith.negf %85 : vector<8x384xf32>
    %87 = math.exp %86 : vector<8x384xf32>
    %cst_21 = arith.constant 1.000000e+00 : f32
    %88 = vector.broadcast %cst_21 : f32 to vector<8x384xf32>
    %89 = arith.addf %88, %87 : vector<8x384xf32>
    %90 = arith.divf %88, %89 : vector<8x384xf32>
    %91 = vector.extract_strided_slice %90 {offsets = [0, 0], sizes = [8, 128], strides = [1, 1]} : vector<8x384xf32> to vector<8x128xf32>
    %92 = vector.extract_strided_slice %90 {offsets = [0, 128], sizes = [8, 128], strides = [1, 1]} : vector<8x384xf32> to vector<8x128xf32>
    %93 = vector.extract_strided_slice %90 {offsets = [0, 256], sizes = [8, 128], strides = [1, 1]} : vector<8x384xf32> to vector<8x128xf32>
    %94 = vector.extract_strided_slice %84 {offsets = [0, 384], sizes = [8, 128], strides = [1, 1]} : vector<8x512xf32> to vector<8x128xf32>
    %95 = math.tanh %94 : vector<8x128xf32>
    %96 = arith.mulf %92, %73 : vector<8x128xf32>
    %97 = arith.mulf %91, %95 : vector<8x128xf32>
    %98 = arith.addf %96, %97 : vector<8x128xf32>
    %99 = math.tanh %98 : vector<8x128xf32>
    %100 = arith.mulf %93, %99 : vector<8x128xf32>
    %101 = arith.index_cast %79 : i32 to index
    %c0_22 = arith.constant 0 : index
    %102 = vector.load %arg9[%101, %c0_22] : memref<64x128xf32, #tpu.memory_space<vmem>>, vector<8x128xf32>
    tpu.vector_store %arg9[%101, %c0_22], %100 {strides = array<i32>} : memref<64x128xf32, #tpu.memory_space<vmem>>, vector<8x128xf32>,
    %c4_i32 = arith.constant 4 : i32
    %c8_i32_23 = arith.constant 8 : i32
    %103 = arith.muli %c4_i32, %c8_i32_23 : i32
    %104 = tpu.assume_multiple %103, 8 : i32
    %105 = arith.index_cast %104 : i32 to index
    %c0_24 = arith.constant 0 : index
    %106 = vector.load %arg0[%105, %c0_24] : memref<64x512xf32, #tpu.memory_space<vmem>>, vector<8x512xf32>
    %107 = arith.truncf %100 : vector<8x128xf32> to vector<8x128xbf16>
    %cst_25 = arith.constant dense<0.000000e+00> : vector<8x512xf32>
    %108 = tpu.matmul %107, %0, %cst_25 {dimension_numbers = #tpu.dot_dimension_numbers<[1], [0], [0], [1], [0, 0, 1, 1], [], []>} : vector<8x128xbf16>, vector<128x512xbf16>, vector<8x512xf32> -> vector<8x512xf32>
    %109 = arith.addf %106, %108 : vector<8x512xf32>
    %110 = vector.extract_strided_slice %109 {offsets = [0, 0], sizes = [8, 384], strides = [1, 1]} : vector<8x512xf32> to vector<8x384xf32>
    %111 = arith.negf %110 : vector<8x384xf32>
    %112 = math.exp %111 : vector<8x384xf32>
    %cst_26 = arith.constant 1.000000e+00 : f32
    %113 = vector.broadcast %cst_26 : f32 to vector<8x384xf32>
    %114 = arith.addf %113, %112 : vector<8x384xf32>
    %115 = arith.divf %113, %114 : vector<8x384xf32>
    %116 = vector.extract_strided_slice %115 {offsets = [0, 0], sizes = [8, 128], strides = [1, 1]} : vector<8x384xf32> to vector<8x128xf32>
    %117 = vector.extract_strided_slice %115 {offsets = [0, 128], sizes = [8, 128], strides = [1, 1]} : vector<8x384xf32> to vector<8x128xf32>
    %118 = vector.extract_strided_slice %115 {offsets = [0, 256], sizes = [8, 128], strides = [1, 1]} : vector<8x384xf32> to vector<8x128xf32>
    %119 = vector.extract_strided_slice %109 {offsets = [0, 384], sizes = [8, 128], strides = [1, 1]} : vector<8x512xf32> to vector<8x128xf32>
    %120 = math.tanh %119 : vector<8x128xf32>
    %121 = arith.mulf %117, %98 : vector<8x128xf32>
    %122 = arith.mulf %116, %120 : vector<8x128xf32>
    %123 = arith.addf %121, %122 : vector<8x128xf32>
    %124 = math.tanh %123 : vector<8x128xf32>
    %125 = arith.mulf %118, %124 : vector<8x128xf32>
    %126 = arith.index_cast %104 : i32 to index
    %c0_27 = arith.constant 0 : index
    %127 = vector.load %arg9[%126, %c0_27] : memref<64x128xf32, #tpu.memory_space<vmem>>, vector<8x128xf32>
    tpu.vector_store %arg9[%126, %c0_27], %125 {strides = array<i32>} : memref<64x128xf32, #tpu.memory_space<vmem>>, vector<8x128xf32>,
    %c5_i32 = arith.constant 5 : i32
    %c8_i32_28 = arith.constant 8 : i32
    %128 = arith.muli %c5_i32, %c8_i32_28 : i32
    %129 = tpu.assume_multiple %128, 8 : i32
    %130 = arith.index_cast %129 : i32 to index
    %c0_29 = arith.constant 0 : index
    %131 = vector.load %arg0[%130, %c0_29] : memref<64x512xf32, #tpu.memory_space<vmem>>, vector<8x512xf32>
    %132 = arith.truncf %125 : vector<8x128xf32> to vector<8x128xbf16>
    %cst_30 = arith.constant dense<0.000000e+00> : vector<8x512xf32>
    %133 = tpu.matmul %132, %0, %cst_30 {dimension_numbers = #tpu.dot_dimension_numbers<[1], [0], [0], [1], [0, 0, 1, 1], [], []>} : vector<8x128xbf16>, vector<128x512xbf16>, vector<8x512xf32> -> vector<8x512xf32>
    %134 = arith.addf %131, %133 : vector<8x512xf32>
    %135 = vector.extract_strided_slice %134 {offsets = [0, 0], sizes = [8, 384], strides = [1, 1]} : vector<8x512xf32> to vector<8x384xf32>
    %136 = arith.negf %135 : vector<8x384xf32>
    %137 = math.exp %136 : vector<8x384xf32>
    %cst_31 = arith.constant 1.000000e+00 : f32
    %138 = vector.broadcast %cst_31 : f32 to vector<8x384xf32>
    %139 = arith.addf %138, %137 : vector<8x384xf32>
    %140 = arith.divf %138, %139 : vector<8x384xf32>
    %141 = vector.extract_strided_slice %140 {offsets = [0, 0], sizes = [8, 128], strides = [1, 1]} : vector<8x384xf32> to vector<8x128xf32>
    %142 = vector.extract_strided_slice %140 {offsets = [0, 128], sizes = [8, 128], strides = [1, 1]} : vector<8x384xf32> to vector<8x128xf32>
    %143 = vector.extract_strided_slice %140 {offsets = [0, 256], sizes = [8, 128], strides = [1, 1]} : vector<8x384xf32> to vector<8x128xf32>
    %144 = vector.extract_strided_slice %134 {offsets = [0, 384], sizes = [8, 128], strides = [1, 1]} : vector<8x512xf32> to vector<8x128xf32>
    %145 = math.tanh %144 : vector<8x128xf32>
    %146 = arith.mulf %142, %123 : vector<8x128xf32>
    %147 = arith.mulf %141, %145 : vector<8x128xf32>
    %148 = arith.addf %146, %147 : vector<8x128xf32>
    %149 = math.tanh %148 : vector<8x128xf32>
    %150 = arith.mulf %143, %149 : vector<8x128xf32>
    %151 = arith.index_cast %129 : i32 to index
    %c0_32 = arith.constant 0 : index
    %152 = vector.load %arg9[%151, %c0_32] : memref<64x128xf32, #tpu.memory_space<vmem>>, vector<8x128xf32>
    tpu.vector_store %arg9[%151, %c0_32], %150 {strides = array<i32>} : memref<64x128xf32, #tpu.memory_space<vmem>>, vector<8x128xf32>,
    %c6_i32 = arith.constant 6 : i32
    %c8_i32_33 = arith.constant 8 : i32
    %153 = arith.muli %c6_i32, %c8_i32_33 : i32
    %154 = tpu.assume_multiple %153, 8 : i32
    %155 = arith.index_cast %154 : i32 to index
    %c0_34 = arith.constant 0 : index
    %156 = vector.load %arg0[%155, %c0_34] : memref<64x512xf32, #tpu.memory_space<vmem>>, vector<8x512xf32>
    %157 = arith.truncf %150 : vector<8x128xf32> to vector<8x128xbf16>
    %cst_35 = arith.constant dense<0.000000e+00> : vector<8x512xf32>
    %158 = tpu.matmul %157, %0, %cst_35 {dimension_numbers = #tpu.dot_dimension_numbers<[1], [0], [0], [1], [0, 0, 1, 1], [], []>} : vector<8x128xbf16>, vector<128x512xbf16>, vector<8x512xf32> -> vector<8x512xf32>
    %159 = arith.addf %156, %158 : vector<8x512xf32>
    %160 = vector.extract_strided_slice %159 {offsets = [0, 0], sizes = [8, 384], strides = [1, 1]} : vector<8x512xf32> to vector<8x384xf32>
    %161 = arith.negf %160 : vector<8x384xf32>
    %162 = math.exp %161 : vector<8x384xf32>
    %cst_36 = arith.constant 1.000000e+00 : f32
    %163 = vector.broadcast %cst_36 : f32 to vector<8x384xf32>
    %164 = arith.addf %163, %162 : vector<8x384xf32>
    %165 = arith.divf %163, %164 : vector<8x384xf32>
    %166 = vector.extract_strided_slice %165 {offsets = [0, 0], sizes = [8, 128], strides = [1, 1]} : vector<8x384xf32> to vector<8x128xf32>
    %167 = vector.extract_strided_slice %165 {offsets = [0, 128], sizes = [8, 128], strides = [1, 1]} : vector<8x384xf32> to vector<8x128xf32>
    %168 = vector.extract_strided_slice %165 {offsets = [0, 256], sizes = [8, 128], strides = [1, 1]} : vector<8x384xf32> to vector<8x128xf32>
    %169 = vector.extract_strided_slice %159 {offsets = [0, 384], sizes = [8, 128], strides = [1, 1]} : vector<8x512xf32> to vector<8x128xf32>
    %170 = math.tanh %169 : vector<8x128xf32>
    %171 = arith.mulf %167, %148 : vector<8x128xf32>
    %172 = arith.mulf %166, %170 : vector<8x128xf32>
    %173 = arith.addf %171, %172 : vector<8x128xf32>
    %174 = math.tanh %173 : vector<8x128xf32>
    %175 = arith.mulf %168, %174 : vector<8x128xf32>
    %176 = arith.index_cast %154 : i32 to index
    %c0_37 = arith.constant 0 : index
    %177 = vector.load %arg9[%176, %c0_37] : memref<64x128xf32, #tpu.memory_space<vmem>>, vector<8x128xf32>
    tpu.vector_store %arg9[%176, %c0_37], %175 {strides = array<i32>} : memref<64x128xf32, #tpu.memory_space<vmem>>, vector<8x128xf32>,
    %c7_i32 = arith.constant 7 : i32
    %c8_i32_38 = arith.constant 8 : i32
    %178 = arith.muli %c7_i32, %c8_i32_38 : i32
    %179 = tpu.assume_multiple %178, 8 : i32
    %180 = arith.index_cast %179 : i32 to index
    %c0_39 = arith.constant 0 : index
    %181 = vector.load %arg0[%180, %c0_39] : memref<64x512xf32, #tpu.memory_space<vmem>>, vector<8x512xf32>
    %182 = arith.truncf %175 : vector<8x128xf32> to vector<8x128xbf16>
    %cst_40 = arith.constant dense<0.000000e+00> : vector<8x512xf32>
    %183 = tpu.matmul %182, %0, %cst_40 {dimension_numbers = #tpu.dot_dimension_numbers<[1], [0], [0], [1], [0, 0, 1, 1], [], []>} : vector<8x128xbf16>, vector<128x512xbf16>, vector<8x512xf32> -> vector<8x512xf32>
    %184 = arith.addf %181, %183 : vector<8x512xf32>
    %185 = vector.extract_strided_slice %184 {offsets = [0, 0], sizes = [8, 384], strides = [1, 1]} : vector<8x512xf32> to vector<8x384xf32>
    %186 = arith.negf %185 : vector<8x384xf32>
    %187 = math.exp %186 : vector<8x384xf32>
    %cst_41 = arith.constant 1.000000e+00 : f32
    %188 = vector.broadcast %cst_41 : f32 to vector<8x384xf32>
    %189 = arith.addf %188, %187 : vector<8x384xf32>
    %190 = arith.divf %188, %189 : vector<8x384xf32>
    %191 = vector.extract_strided_slice %190 {offsets = [0, 0], sizes = [8, 128], strides = [1, 1]} : vector<8x384xf32> to vector<8x128xf32>
    %192 = vector.extract_strided_slice %190 {offsets = [0, 128], sizes = [8, 128], strides = [1, 1]} : vector<8x384xf32> to vector<8x128xf32>
    %193 = vector.extract_strided_slice %190 {offsets = [0, 256], sizes = [8, 128], strides = [1, 1]} : vector<8x384xf32> to vector<8x128xf32>
    %194 = vector.extract_strided_slice %184 {offsets = [0, 384], sizes = [8, 128], strides = [1, 1]} : vector<8x512xf32> to vector<8x128xf32>
    %195 = math.tanh %194 : vector<8x128xf32>
    %196 = arith.mulf %192, %173 : vector<8x128xf32>
    %197 = arith.mulf %191, %195 : vector<8x128xf32>
    %198 = arith.addf %196, %197 : vector<8x128xf32>
    %199 = math.tanh %198 : vector<8x128xf32>
    %200 = arith.mulf %193, %199 : vector<8x128xf32>
    %201 = arith.index_cast %179 : i32 to index
    %c0_42 = arith.constant 0 : index
    %202 = vector.load %arg9[%201, %c0_42] : memref<64x128xf32, #tpu.memory_space<vmem>>, vector<8x128xf32>
    tpu.vector_store %arg9[%201, %c0_42], %200 {strides = array<i32>} : memref<64x128xf32, #tpu.memory_space<vmem>>, vector<8x128xf32>,
    %c8_i32_43 = arith.constant 8 : i32
    %c0_44 = arith.constant 0 : index
    %c0_45 = arith.constant 0 : index
    %203 = vector.load %arg7[%c0_44, %c0_45] : memref<8x128xf32, #tpu.memory_space<vmem>>, vector<8x128xf32>
    tpu.vector_store %arg7[%c0_44, %c0_45], %200 {strides = array<i32>} : memref<8x128xf32, #tpu.memory_space<vmem>>, vector<8x128xf32>,
    %c0_46 = arith.constant 0 : index
    %c0_47 = arith.constant 0 : index
    %204 = vector.load %arg8[%c0_46, %c0_47] : memref<8x128xf32, #tpu.memory_space<vmem>>, vector<8x128xf32>
    tpu.vector_store %arg8[%c0_46, %c0_47], %198 {strides = array<i32>} : memref<8x128xf32, #tpu.memory_space<vmem>>, vector<8x128xf32>,
    %c0_48 = arith.constant 0 : index
    %c0_49 = arith.constant 0 : index
    %205 = vector.load %arg9[%c0_48, %c0_49] : memref<64x128xf32, #tpu.memory_space<vmem>>, vector<64x128xf32>
    %206 = arith.truncf %205 : vector<64x128xf32> to vector<64x128xbf16>
    %c0_50 = arith.constant 0 : index
    %c0_51 = arith.constant 0 : index
    %207 = vector.load %arg2[%c0_50, %c0_51] : memref<128x128xbf16, #tpu.memory_space<vmem>>, vector<128x128xbf16>
    %cst_52 = arith.constant dense<0.000000e+00> : vector<64x128xf32>
    %208 = tpu.matmul %206, %207, %cst_52 {dimension_numbers = #tpu.dot_dimension_numbers<[1], [0], [0], [1], [0, 0, 1, 1], [], []>} : vector<64x128xbf16>, vector<128x128xbf16>, vector<64x128xf32> -> vector<64x128xf32>
    %c0_53 = arith.constant 0 : index
    %c0_54 = arith.constant 0 : index
    %209 = vector.load %arg3[%c0_53, %c0_54] : memref<1x128xf32, #tpu.memory_space<vmem>>, vector<1x128xf32>
    %210 = vector.broadcast %209 : vector<1x128xf32> to vector<64x128xf32>
    %211 = arith.addf %208, %210 : vector<64x128xf32>
    %c0_55 = arith.constant 0 : index
    %c0_56 = arith.constant 0 : index
    %212 = vector.load %arg6[%c0_55, %c0_56] : memref<64x128xf32, #tpu.memory_space<vmem>>, vector<64x128xf32>
    tpu.vector_store %arg6[%c0_55, %c0_56], %211 {strides = array<i32>} : memref<64x128xf32, #tpu.memory_space<vmem>>, vector<64x128xf32>,
    return
  }
}

</mosaic_0001>

<bundles_post_ra>
// kernel: _lambda_.1
= control target key start
LH: loop header
LB: loop body
LE: loop exit
PB: predicated region body
PF: predicated region fallthrough
CT: control target
= control target key end

     0   :  { %v1687_v1 = vmov 0   ;;  %s2419_s1 = inlined_call_operand.vmem [shape: bf16[128,512], index: 1, kind: input, shape index: {}]   ;;  %s2420_s4 = inlined_call_operand.vmem [shape: f32[8,128], index: 4, kind: input, shape index: {}, may-alias: {4,5}]   ;;  %s2421_s0 = inlined_call_operand.vmem [shape: f32[64,512], index: 0, kind: input, shape index: {}]   ;;  %s2422_s5 = inlined_call_operand.vmem [shape: f32[8,128], index: 5, kind: input, shape index: {}, may-alias: {4,5}]   ;;  %s2423_s2 = inlined_call_operand.vmem [shape: bf16[128,128], index: 2, kind: input, shape index: {}]   ;;  %s2424_s3 = inlined_call_operand.vmem [shape: f32[1,128], index: 3, kind: input, shape index: {}]   ;;  %s2425_s6 = inlined_call_operand.vmem [shape: f32[64,128], index: 6, kind: output, shape index: {0}]   ;;  %s2426_s8 = inlined_call_operand.vmem [shape: f32[8,128], index: 8, kind: output, shape index: {2}]   ;;  %s2427_s7 = inlined_call_operand.vmem [shape: f32[8,128], index: 7, kind: output, shape index: {1}]  }
   0x1   :  { %v1736_v0 = vld [vmem:[%s2419_s1 + $0xe4] ss:$16 sps:$4 sm:$0xff]   ;;  %261 = vmatprep.mubr.bf16.mxu1 %v1687_v1  ;;  %380 = vmatprep.mubr.bf16.mxu0 %v1687_v1  ;;  %v1743_v2 = vld [vmem:[%s2419_s1 + $0xe0] ss:$16 sps:$4 sm:$0xff]   ;;  %v1850_v18 = vld [vmem:[%s2419_s1 + $0xec] ss:$16 sps:$4 sm:$0xff]  }
   0x2   :  { %229 = vmatprep.subr.bf16.mxu1 %v1736_v0  ;;  %v1749_v3 = vld [vmem:[%s2419_s1 + $0xc4] ss:$16 sps:$4 sm:$0xff]   ;;  %348 = vmatprep.subr.bf16.mxu0 %v1736_v0  ;;  %v1756_v4 = vld [vmem:[%s2419_s1 + $0xc0] ss:$16 sps:$4 sm:$0xff]   ;;  %v1857_v20 = vld [vmem:[%s2419_s1 + $0xe8] ss:$16 sps:$4 sm:$0xff]  }
   0x3   :  { %230 = vmatpush1.bf16.msra.mxu1 %v1743_v2  ;;  %349 = vmatpush1.bf16.msra.mxu0 %v1743_v2  ;;  %v1763_v5 = vld [vmem:[%s2419_s1 + $0xa4] ss:$16 sps:$4 sm:$0xff]   ;;  %v1770_v6 = vld [vmem:[%s2419_s1 + $0xa0] ss:$16 sps:$4 sm:$0xff]   ;;  %v1864_v21 = vld [vmem:[%s2419_s1 + $0xcc] ss:$16 sps:$4 sm:$0xff]  }
   0x4   :  { %231 = vmatprep.subr.bf16.mxu1 %v1749_v3  ;;  %350 = vmatprep.subr.bf16.mxu0 %v1749_v3  ;;  %v1777_v7 = vld [vmem:[%s2419_s1 + $0x84] ss:$16 sps:$4 sm:$0xff]   ;;  %v1784_v8 = vld [vmem:[%s2419_s1 + $0x80] ss:$16 sps:$4 sm:$0xff]   ;;  %v1871_v22 = vld [vmem:[%s2419_s1 + $0xc8] ss:$16 sps:$4 sm:$0xff]  }
   0x5   :  { %v1791_v9 = vld [vmem:[%s2419_s1 + $0x64] ss:$16 sps:$4 sm:$0xff]   ;;  %v1798_v10 = vld [vmem:[%s2419_s1 + $0x60] ss:$16 sps:$4 sm:$0xff]   ;;  %v1878_v23 = vld [vmem:[%s2419_s1 + $0xac] ss:$16 sps:$4 sm:$0xff]  }
   0x6   :  { %v1805_v11 = vld [vmem:[%s2419_s1 + $0x44] ss:$16 sps:$4 sm:$0xff]   ;;  %v1812_v12 = vld [vmem:[%s2419_s1 + $0x40] ss:$16 sps:$4 sm:$0xff]   ;;  %v1884_v24 = vld [vmem:[%s2419_s1 + $0xa8] ss:$16 sps:$4 sm:$0xff]  }
   0x7   :  { %232 = vmatpush1.bf16.msra.mxu1 %v1756_v4  ;;  %351 = vmatpush1.bf16.msra.mxu0 %v1756_v4  ;;  %v1819_v13 = vld [vmem:[%s2419_s1 + $0x24] ss:$16 sps:$4 sm:$0xff]   ;;  %v1826_v14 = vld [vmem:[%s2419_s1 + $0x20] ss:$16 sps:$4 sm:$0xff]   ;;  %v1890_v25 = vld [vmem:[%s2419_s1 + $0x8c] ss:$16 sps:$4 sm:$0xff]  }
   0x8   :  { %233 = vmatprep.subr.bf16.mxu1 %v1763_v5  ;;  %352 = vmatprep.subr.bf16.mxu0 %v1763_v5  ;;  %v1833_v15 = vld [vmem:[%s2419_s1 + $0x4] ss:$16 sps:$4 sm:$0xff]   ;;  %v1840_v16 = vld [vmem:[%s2419_s1] ss:$16 sps:$4 sm:$0xff]   ;;  %v1896_v26 = vld [vmem:[%s2419_s1 + $0x88] ss:$16 sps:$4 sm:$0xff]  }
   0x9   :  { %v59_v17 = vld [vmem:[%s2420_s4] sm:$0xff]  ;;  %v1902_v27 = vld [vmem:[%s2419_s1 + $0x6c] ss:$16 sps:$4 sm:$0xff]   ;;  %v1908_v28 = vld [vmem:[%s2419_s1 + $0x68] ss:$16 sps:$4 sm:$0xff]  }
   0xa   :  { %v68_v19 = vpack.c.bf16 %v59_v17, %v59_v17  ;;  %v1914_v29 = vld [vmem:[%s2419_s1 + $0x4c] ss:$16 sps:$4 sm:$0xff]   ;;  %v1920_v30 = vld [vmem:[%s2419_s1 + $0x48] ss:$16 sps:$4 sm:$0xff]   ;;  %v64_v37 = vld [vmem:[%s2421_s0] sm:$0xff] }
   0xb   :  { %234 = vmatpush1.bf16.msra.mxu1 %v1770_v6  ;;  %353 = vmatpush1.bf16.msra.mxu0 %v1770_v6  ;;  %v1926_v31 = vld [vmem:[%s2419_s1 + $0x2c] ss:$16 sps:$4 sm:$0xff]   ;;  %v1932_v32 = vld [vmem:[%s2419_s1 + $0x28] ss:$16 sps:$4 sm:$0xff]   ;;  %v66_v47 = vld [vmem:[%s2421_s0 + $0x10] sm:$0xff] }
   0xc   :  { %235 = vmatprep.subr.bf16.mxu1 %v1777_v7  ;;  %354 = vmatprep.subr.bf16.mxu0 %v1777_v7  ;;  %v1938_v33 = vld [vmem:[%s2419_s1 + $0xc] ss:$16 sps:$4 sm:$0xff]   ;;  %v1944_v34 = vld [vmem:[%s2419_s1 + $0x8] ss:$16 sps:$4 sm:$0xff]   ;;  %v60_v60 = vld [vmem:[%s2422_s5] sm:$0xff] }
   0xd   :  { %v65_v39 = vld [vmem:[%s2421_s0 + $0x8] sm:$0xff]  ;;  %v67_v51 = vld [vmem:[%s2421_s0 + $0x18] sm:$0xff] }
   0xf   :  { %236 = vmatpush1.bf16.msra.mxu1 %v1784_v8  ;;  %355 = vmatpush1.bf16.msra.mxu0 %v1784_v8 }
  0x10   :  { %237 = vmatprep.subr.bf16.mxu1 %v1791_v9  ;;  %356 = vmatprep.subr.bf16.mxu0 %v1791_v9 }
  0x13   :  { %238 = vmatpush1.bf16.msra.mxu1 %v1798_v10  ;;  %357 = vmatpush1.bf16.msra.mxu0 %v1798_v10 }
  0x14   :  { %239 = vmatprep.subr.bf16.mxu1 %v1805_v11  ;;  %358 = vmatprep.subr.bf16.mxu0 %v1805_v11 }
  0x17   :  { %240 = vmatpush1.bf16.msra.mxu1 %v1812_v12  ;;  %359 = vmatpush1.bf16.msra.mxu0 %v1812_v12 }
  0x18   :  { %241 = vmatprep.subr.bf16.mxu1 %v1819_v13  ;;  %360 = vmatprep.subr.bf16.mxu0 %v1819_v13 }
  0x1b   :  { %242 = vmatpush1.bf16.msra.mxu1 %v1826_v14  ;;  %361 = vmatpush1.bf16.msra.mxu0 %v1826_v14 }
  0x1c   :  { %243 = vmatprep.subr.bf16.mxu1 %v1833_v15  ;;  %362 = vmatprep.subr.bf16.mxu0 %v1833_v15 }
  0x1f   :  { %244 = vmatpush1.bf16.msra.mxu1 %v1840_v16  ;;  %363 = vmatpush1.bf16.msra.mxu0 %v1840_v16 }
  0x20   :  { %270 = vmatprep.subr.bf16.mxu1 %v1850_v18  ;;  %468 = vmatprep.subr.bf16.mxu0 %v1736_v0 }
  0x22   :  { %262 = vmatmul.mubr.bf16.vlgmr.msra.gmra.mxu1 %v68_v19 }
  0x23   :  { %271 = vmatpush1.bf16.msra.mxu1 %v1857_v20  ;;  %302 = vmatprep.mubr.bf16.mxu1 %v1687_v1 }
  0x24   :  { %272 = vmatprep.subr.bf16.mxu1 %v1864_v21 }
  0x27   :  { %273 = vmatpush1.bf16.msra.mxu1 %v1871_v22 }
  0x28   :  { %274 = vmatprep.subr.bf16.mxu1 %v1878_v23 }
  0x2b   :  { %275 = vmatpush1.bf16.msra.mxu1 %v1884_v24 }
  0x2c   :  { %276 = vmatprep.subr.bf16.mxu1 %v1890_v25 }
  0x2f   :  { %277 = vmatpush1.bf16.msra.mxu1 %v1896_v26 }
  0x30   :  { %278 = vmatprep.subr.bf16.mxu1 %v1902_v27 }
  0x33   :  { %279 = vmatpush1.bf16.msra.mxu1 %v1908_v28 }
  0x34   :  { %280 = vmatprep.subr.bf16.mxu1 %v1914_v29 }
  0x37   :  { %281 = vmatpush1.bf16.msra.mxu1 %v1920_v30 }
  0x38   :  { %282 = vmatprep.subr.bf16.mxu1 %v1926_v31 }
  0x3b   :  { %283 = vmatpush1.bf16.msra.mxu1 %v1932_v32 }
  0x3c   :  { %284 = vmatprep.subr.bf16.mxu1 %v1938_v33 }
  0x3f   :  { %285 = vmatpush1.bf16.msra.mxu1 %v1944_v34 }
  0x40   :  { %389 = vmatprep.subr.bf16.mxu1 %v1850_v18 }
  0x42   :  { %303 = vmatmul.mubr.bf16.vlgmr.msra.gmra.mxu1 %v68_v19 }
  0x43   :  { %390 = vmatpush1.bf16.msra.mxu1 %v1857_v20  ;;  %421 = vmatprep.mubr.bf16.mxu1 %v1687_v1 }
  0x44   :  { %391 = vmatprep.subr.bf16.mxu1 %v1864_v21 }
  0x47   :  { %392 = vmatpush1.bf16.msra.mxu1 %v1871_v22 }
  0x48   :  { %393 = vmatprep.subr.bf16.mxu1 %v1878_v23 }
  0x4b   :  { %394 = vmatpush1.bf16.msra.mxu1 %v1884_v24 }
  0x4c   :  { %395 = vmatprep.subr.bf16.mxu1 %v1890_v25 }
  0x4f   :  { %396 = vmatpush1.bf16.msra.mxu1 %v1896_v26 }
  0x50   :  { %397 = vmatprep.subr.bf16.mxu1 %v1902_v27 }
  0x53   :  { %398 = vmatpush1.bf16.msra.mxu1 %v1908_v28 }
  0x54   :  { %399 = vmatprep.subr.bf16.mxu1 %v1914_v29 }
  0x57   :  { %400 = vmatpush1.bf16.msra.mxu1 %v1920_v30 }
  0x58   :  { %401 = vmatprep.subr.bf16.mxu1 %v1926_v31 }
  0x5b   :  { %402 = vmatpush1.bf16.msra.mxu1 %v1932_v32 }
  0x5c   :  { %403 = vmatprep.subr.bf16.mxu1 %v1938_v33 }
  0x5f   :  { %404 = vmatpush1.bf16.msra.mxu1 %v1944_v34 }
  0x60   :  { %509 = vmatprep.subr.bf16.mxu1 %v1850_v18 }
  0xe2   :  { %v263_v35 = vpop.f32.mrf.mxu1 }
  0xe3   :  { %v311_v41 = vadd.f32 %v263_v35, %v64_v37 }
  0xe4   :  { %v265_v36 = vpop.f32.mrf.mxu1 }
  0xe5   :  { %v312_v42 = vadd.f32 %v265_v36, %v65_v39  ;;  %v1389_v43 = vmul.f32 -1.442695, %v311_v41 }
  0xe6   :  { %v267_v38 = vpop.f32.mrf.mxu1 }
  0xe7   :  { %v1390_v44 = vmul.f32 -1.442695, %v312_v42  ;;  %1543 = vpow2.f32 %v1389_v43  ;;  %v1393_v43 = vld [vmem:[%s2421_s0 + $0x28] sm:$0xff] }
  0xe8   :  { %v268_v40 = vpop.f32.mrf.mxu1 }
  0xe9   :  { %1545 = vpow2.f32 %v1390_v44  ;;  %v1392_v40 = vld [vmem:[%s2421_s0 + $0x20] sm:$0xff] }
  0xf4   :  { %v1544_v45 = vpop.eup %1543 }
  0xf5   :  { %v324_v48 = vadd.f32 1.0, %v1544_v45 }
  0xf6   :  { %v1546_v46 = vpop.eup %1545 }
  0xf7   :  { %v325_v49 = vadd.f32 1.0, %v1546_v46  ;;  %1547 = vrcp.f32 %v324_v48 }
  0xf9   :  { %1549 = vrcp.f32 %v325_v49 }
 0x102   :  { %v304_v50 = vpop.f32.mrf.mxu1 }
 0x103   :  { %v313_v52 = vadd.f32 %v304_v50, %v66_v47 }
 0x104   :  { %v306_v53 = vpop.f32.mrf.mxu1  ;;  %v1548_v58 = vpop.eup %1547 }
 0x105   :  { %v1391_v54 = vmul.f32 -1.442695, %v313_v52  ;;  %v314_v55 = vadd.f32 %v306_v53, %v67_v51 }
 0x106   :  { %v308_v56 = vpop.f32.mrf.mxu1  ;;  %v1550_v59 = vpop.eup %1549 }
 0x107   :  { %1551 = vpow2.f32 %v1391_v54  ;;  %v334_v17 = vmul.f32 %v1550_v59, %v60_v60  ;;  %v1394_v54 = vld [vmem:[%s2421_s0 + $0x30] sm:$0xff]  ;;  %v1395_v56 = vld [vmem:[%s2421_s0 + $0x38] sm:$0xff] }
 0x108   :  { %1553 = vtanh.f32 %v314_v55  ;;  %v309_v57 = vpop.f32.mrf.mxu1 }
 0x114   :  { %v1552_v61 = vpop.eup %1551 }
 0x115   :  { %v1554_v62 = vpop.eup %1553  ;;  %v326_v63 = vadd.f32 1.0, %v1552_v61 }
 0x116   :  { %v335_v19 = vmul.f32 %v1554_v62, %v1548_v58 }
 0x117   :  { %1555 = vrcp.f32 %v326_v63 }
 0x118   :  { %v1981_v35 = vadd.f32 %v335_v19, %v334_v17 }
 0x11a   :  { %1557 = vtanh.f32 %v1981_v35 }
 0x124   :  { %v1556_v36 = vpop.eup %1555 }
 0x127   :  { %v1558_v37 = vpop.eup %1557 }
 0x128   :  { %v1984_v38 = vmul.f32 %v1558_v37, %v1556_v36 }
 0x12a   :  { %v347_v39 = vpack.c.bf16 %v1984_v38, %v1984_v38 }
 0x12c   :  { %381 = vmatmul.mubr.bf16.vlgmr.msra.gmra.mxu0 %v347_v39  ;;  %422 = vmatmul.mubr.bf16.vlgmr.msra.gmra.mxu1 %v347_v39 }
 0x12d   :  { %469 = vmatpush1.bf16.msra.mxu0 %v1743_v2  ;;  %510 = vmatpush1.bf16.msra.mxu1 %v1857_v20 }
 0x12e   :  { %470 = vmatprep.subr.bf16.mxu0 %v1749_v3  ;;  %511 = vmatprep.subr.bf16.mxu1 %v1864_v21 }
 0x12f   :  { %500 = vmatprep.mubr.bf16.mxu0 %v1687_v1  ;;  %541 = vmatprep.mubr.bf16.mxu1 %v1687_v1 }
 0x131   :  { %471 = vmatpush1.bf16.msra.mxu0 %v1756_v4  ;;  %512 = vmatpush1.bf16.msra.mxu1 %v1871_v22 }
 0x132   :  { %472 = vmatprep.subr.bf16.mxu0 %v1763_v5  ;;  %513 = vmatprep.subr.bf16.mxu1 %v1878_v23 }
 0x135   :  { %473 = vmatpush1.bf16.msra.mxu0 %v1770_v6  ;;  %514 = vmatpush1.bf16.msra.mxu1 %v1884_v24 }
 0x136   :  { %474 = vmatprep.subr.bf16.mxu0 %v1777_v7  ;;  %515 = vmatprep.subr.bf16.mxu1 %v1890_v25 }
 0x139   :  { %475 = vmatpush1.bf16.msra.mxu0 %v1784_v8  ;;  %516 = vmatpush1.bf16.msra.mxu1 %v1896_v26 }
 0x13a   :  { %476 = vmatprep.subr.bf16.mxu0 %v1791_v9  ;;  %517 = vmatprep.subr.bf16.mxu1 %v1902_v27 }
 0x13d   :  { %477 = vmatpush1.bf16.msra.mxu0 %v1798_v10  ;;  %518 = vmatpush1.bf16.msra.mxu1 %v1908_v28 }
 0x13e   :  { %478 = vmatprep.subr.bf16.mxu0 %v1805_v11  ;;  %519 = vmatprep.subr.bf16.mxu1 %v1914_v29 }
 0x141   :  { %479 = vmatpush1.bf16.msra.mxu0 %v1812_v12  ;;  %520 = vmatpush1.bf16.msra.mxu1 %v1920_v30 }
 0x142   :  { %480 = vmatprep.subr.bf16.mxu0 %v1819_v13  ;;  %521 = vmatprep.subr.bf16.mxu1 %v1926_v31 }
 0x145   :  { %481 = vmatpush1.bf16.msra.mxu0 %v1826_v14  ;;  %522 = vmatpush1.bf16.msra.mxu1 %v1932_v32 }
 0x146   :  { %482 = vmatprep.subr.bf16.mxu0 %v1833_v15  ;;  %523 = vmatprep.subr.bf16.mxu1 %v1938_v33 }
 0x149   :  { %483 = vmatpush1.bf16.msra.mxu0 %v1840_v16  ;;  %524 = vmatpush1.bf16.msra.mxu1 %v1944_v34 }
 0x14a   :  { %588 = vmatprep.subr.bf16.mxu0 %v1736_v0  ;;  %629 = vmatprep.subr.bf16.mxu1 %v1850_v18 }
 0x1ec   :  { %v382_v41 = vpop.f32.mrf.mxu0  ;;  %v423_v42 = vpop.f32.mrf.mxu1 }
 0x1ed   :  { %v430_v44 = vadd.f32 %v1392_v40, %v382_v41  ;;  %v432_v55 = vadd.f32 %v1394_v54, %v423_v42 }
 0x1ee   :  { %v384_v45 = vpop.f32.mrf.mxu0  ;;  %v425_v46 = vpop.f32.mrf.mxu1 }
 0x1ef   :  { %v1396_v47 = vmul.f32 -1.442695, %v430_v44  ;;  %v431_v48 = vadd.f32 %v1393_v43, %v384_v45  ;;  %v1398_v57 = vmul.f32 -1.442695, %v432_v55  ;;  %v433_v59 = vadd.f32 %v1395_v56, %v425_v46 }
 0x1f0   :  { %v386_v49 = vpop.f32.mrf.mxu0  ;;  %v427_v50 = vpop.f32.mrf.mxu1 }
 0x1f1   :  { %1559 = vpow2.f32 %v1396_v47  ;;  %v1397_v51 = vmul.f32 -1.442695, %v431_v48  ;;  %v1400_v48 = vld [vmem:[%s2421_s0 + $0x48] sm:$0xff] }
 0x1f2   :  { %v387_v52 = vpop.f32.mrf.mxu0  ;;  %v428_v53 = vpop.f32.mrf.mxu1 }
 0x1f3   :  { %1561 = vpow2.f32 %v1397_v51 }
 0x1f4   :  { %1563 = vpow2.f32 %v1398_v57 }
 0x1fe   :  { %v1560_v58 = vpop.eup %1559 }
 0x1ff   :  { %v443_v60 = vadd.f32 1.0, %v1560_v58 }
 0x200   :  { %v1562_v61 = vpop.eup %1561 }
 0x201   :  { %1565 = vrcp.f32 %v443_v60  ;;  %v444_v62 = vadd.f32 1.0, %v1562_v61  ;;  %v1564_v63 = vpop.eup %1563  ;;  %v1402_v61 = vld [vmem:[%s2421_s0 + $0x58] sm:$0xff] }
 0x202   :  { %1567 = vtanh.f32 %v433_v59  ;;  %v445_v37 = vadd.f32 1.0, %v1564_v63  ;;  %v1401_v59 = vld [vmem:[%s2421_s0 + $0x50] sm:$0xff] }
 0x203   :  { %1569 = vrcp.f32 %v444_v62 }
 0x204   :  { %1571 = vrcp.f32 %v445_v37 }
 0x20e   :  { %v1566_v17 = vpop.eup %1565 }
 0x20f   :  { %v1568_v19 = vpop.eup %1567 }
 0x210   :  { %v1570_v36 = vpop.eup %1569  ;;  %v454_v40 = vmul.f32 %v1568_v19, %v1566_v17 }
 0x211   :  { %v453_v39 = vmul.f32 %v1570_v36, %v1981_v35  ;;  %v1572_v42 = vpop.eup %1571  ;;  %v1399_v35 = vld [vmem:[%s2421_s0 + $0x40] sm:$0xff] }
 0x213   :  { %v2035_v41 = vadd.f32 %v454_v40, %v453_v39 }
 0x215   :  { %1573 = vtanh.f32 %v2035_v41 }
 0x222   :  { %v1574_v43 = vpop.eup %1573 }
 0x223   :  { %v2038_v44 = vmul.f32 %v1574_v43, %v1572_v42 }
 0x225   :  { %v467_v45 = vpack.c.bf16 %v2038_v44, %v2038_v44 }
 0x227   :  { %501 = vmatmul.mubr.bf16.vlgmr.msra.gmra.mxu0 %v467_v45  ;;  %542 = vmatmul.mubr.bf16.vlgmr.msra.gmra.mxu1 %v467_v45 }
 0x228   :  { %589 = vmatpush1.bf16.msra.mxu0 %v1743_v2  ;;  %630 = vmatpush1.bf16.msra.mxu1 %v1857_v20 }
 0x229   :  { %590 = vmatprep.subr.bf16.mxu0 %v1749_v3  ;;  %631 = vmatprep.subr.bf16.mxu1 %v1864_v21 }
 0x22a   :  { %620 = vmatprep.mubr.bf16.mxu0 %v1687_v1  ;;  %661 = vmatprep.mubr.bf16.mxu1 %v1687_v1 }
 0x22c   :  { %591 = vmatpush1.bf16.msra.mxu0 %v1756_v4  ;;  %632 = vmatpush1.bf16.msra.mxu1 %v1871_v22 }
 0x22d   :  { %592 = vmatprep.subr.bf16.mxu0 %v1763_v5  ;;  %633 = vmatprep.subr.bf16.mxu1 %v1878_v23 }
 0x230   :  { %593 = vmatpush1.bf16.msra.mxu0 %v1770_v6  ;;  %634 = vmatpush1.bf16.msra.mxu1 %v1884_v24 }
 0x231   :  { %594 = vmatprep.subr.bf16.mxu0 %v1777_v7  ;;  %635 = vmatprep.subr.bf16.mxu1 %v1890_v25 }
 0x234   :  { %595 = vmatpush1.bf16.msra.mxu0 %v1784_v8  ;;  %636 = vmatpush1.bf16.msra.mxu1 %v1896_v26 }
 0x235   :  { %596 = vmatprep.subr.bf16.mxu0 %v1791_v9  ;;  %637 = vmatprep.subr.bf16.mxu1 %v1902_v27 }
 0x238   :  { %597 = vmatpush1.bf16.msra.mxu0 %v1798_v10  ;;  %638 = vmatpush1.bf16.msra.mxu1 %v1908_v28 }
 0x239   :  { %598 = vmatprep.subr.bf16.mxu0 %v1805_v11  ;;  %639 = vmatprep.subr.bf16.mxu1 %v1914_v29 }
 0x23c   :  { %599 = vmatpush1.bf16.msra.mxu0 %v1812_v12  ;;  %640 = vmatpush1.bf16.msra.mxu1 %v1920_v30 }
 0x23d   :  { %600 = vmatprep.subr.bf16.mxu0 %v1819_v13  ;;  %641 = vmatprep.subr.bf16.mxu1 %v1926_v31 }
 0x240   :  { %601 = vmatpush1.bf16.msra.mxu0 %v1826_v14  ;;  %642 = vmatpush1.bf16.msra.mxu1 %v1932_v32 }
 0x241   :  { %602 = vmatprep.subr.bf16.mxu0 %v1833_v15  ;;  %643 = vmatprep.subr.bf16.mxu1 %v1938_v33 }
 0x244   :  { %603 = vmatpush1.bf16.msra.mxu0 %v1840_v16  ;;  %644 = vmatpush1.bf16.msra.mxu1 %v1944_v34 }
 0x245   :  { %708 = vmatprep.subr.bf16.mxu0 %v1736_v0  ;;  %749 = vmatprep.subr.bf16.mxu1 %v1850_v18 }
 0x2e7   :  { %v502_v46 = vpop.f32.mrf.mxu0  ;;  %v543_v47 = vpop.f32.mrf.mxu1 }
 0x2e8   :  { %v550_v49 = vadd.f32 %v1399_v35, %v502_v46  ;;  %v552_v60 = vadd.f32 %v1401_v59, %v543_v47 }
 0x2e9   :  { %v504_v50 = vpop.f32.mrf.mxu0  ;;  %v545_v51 = vpop.f32.mrf.mxu1 }
 0x2ea   :  { %v1403_v52 = vmul.f32 -1.442695, %v550_v49  ;;  %v551_v53 = vadd.f32 %v1400_v48, %v504_v50  ;;  %v1405_v62 = vmul.f32 -1.442695, %v552_v60  ;;  %v553_v17 = vadd.f32 %v1402_v61, %v545_v51 }
 0x2eb   :  { %v506_v54 = vpop.f32.mrf.mxu0  ;;  %v547_v55 = vpop.f32.mrf.mxu1 }
 0x2ec   :  { %1575 = vpow2.f32 %v1403_v52  ;;  %v1404_v56 = vmul.f32 -1.442695, %v551_v53  ;;  %v1407_v54 = vld [vmem:[%s2421_s0 + $0x68] sm:$0xff] }
 0x2ed   :  { %v507_v57 = vpop.f32.mrf.mxu0  ;;  %v548_v58 = vpop.f32.mrf.mxu1 }
 0x2ee   :  { %1577 = vpow2.f32 %v1404_v56 }
 0x2ef   :  { %1579 = vpow2.f32 %v1405_v62 }
 0x2f9   :  { %v1576_v63 = vpop.eup %1575 }
 0x2fa   :  { %v563_v19 = vadd.f32 1.0, %v1576_v63 }
 0x2fb   :  { %v1578_v36 = vpop.eup %1577 }
 0x2fc   :  { %1581 = vrcp.f32 %v563_v19  ;;  %v564_v37 = vadd.f32 1.0, %v1578_v36  ;;  %v1580_v39 = vpop.eup %1579  ;;  %v1408_v19 = vld [vmem:[%s2421_s0 + $0x70] sm:$0xff] }
 0x2fd   :  { %1583 = vtanh.f32 %v553_v17  ;;  %v565_v45 = vadd.f32 1.0, %v1580_v39 }
 0x2fe   :  { %1585 = vrcp.f32 %v564_v37  ;;  %v1409_v37 = vld [vmem:[%s2421_s0 + $0x78] sm:$0xff] }
 0x2ff   :  { %1587 = vrcp.f32 %v565_v45 }
 0x309   :  { %v1582_v40 = vpop.eup %1581 }
 0x30a   :  { %v1584_v42 = vpop.eup %1583 }
 0x30b   :  { %v1586_v43 = vpop.eup %1585  ;;  %v574_v46 = vmul.f32 %v1584_v42, %v1582_v40 }
 0x30c   :  { %v573_v35 = vmul.f32 %v1586_v43, %v2035_v41  ;;  %v1588_v48 = vpop.eup %1587  ;;  %v1406_v41 = vld [vmem:[%s2421_s0 + $0x60] sm:$0xff] }
 0x30e   :  { %v2089_v47 = vadd.f32 %v574_v46, %v573_v35 }
 0x310   :  { %1589 = vtanh.f32 %v2089_v47 }
 0x31d   :  { %v1590_v49 = vpop.eup %1589 }
 0x31e   :  { %v2092_v50 = vmul.f32 %v1590_v49, %v1588_v48 }
 0x320   :  { %v587_v51 = vpack.c.bf16 %v2092_v50, %v2092_v50 }
 0x322   :  { %621 = vmatmul.mubr.bf16.vlgmr.msra.gmra.mxu0 %v587_v51  ;;  %662 = vmatmul.mubr.bf16.vlgmr.msra.gmra.mxu1 %v587_v51 }
 0x323   :  { %709 = vmatpush1.bf16.msra.mxu0 %v1743_v2  ;;  %750 = vmatpush1.bf16.msra.mxu1 %v1857_v20 }
 0x324   :  { %710 = vmatprep.subr.bf16.mxu0 %v1749_v3  ;;  %751 = vmatprep.subr.bf16.mxu1 %v1864_v21 }
 0x325   :  { %740 = vmatprep.mubr.bf16.mxu0 %v1687_v1  ;;  %781 = vmatprep.mubr.bf16.mxu1 %v1687_v1 }
 0x327   :  { %711 = vmatpush1.bf16.msra.mxu0 %v1756_v4  ;;  %752 = vmatpush1.bf16.msra.mxu1 %v1871_v22 }
 0x328   :  { %712 = vmatprep.subr.bf16.mxu0 %v1763_v5  ;;  %753 = vmatprep.subr.bf16.mxu1 %v1878_v23 }
 0x32b   :  { %713 = vmatpush1.bf16.msra.mxu0 %v1770_v6  ;;  %754 = vmatpush1.bf16.msra.mxu1 %v1884_v24 }
 0x32c   :  { %714 = vmatprep.subr.bf16.mxu0 %v1777_v7  ;;  %755 = vmatprep.subr.bf16.mxu1 %v1890_v25 }
 0x32f   :  { %715 = vmatpush1.bf16.msra.mxu0 %v1784_v8  ;;  %756 = vmatpush1.bf16.msra.mxu1 %v1896_v26 }
 0x330   :  { %716 = vmatprep.subr.bf16.mxu0 %v1791_v9  ;;  %757 = vmatprep.subr.bf16.mxu1 %v1902_v27 }
 0x333   :  { %717 = vmatpush1.bf16.msra.mxu0 %v1798_v10  ;;  %758 = vmatpush1.bf16.msra.mxu1 %v1908_v28 }
 0x334   :  { %718 = vmatprep.subr.bf16.mxu0 %v1805_v11  ;;  %759 = vmatprep.subr.bf16.mxu1 %v1914_v29 }
 0x337   :  { %719 = vmatpush1.bf16.msra.mxu0 %v1812_v12  ;;  %760 = vmatpush1.bf16.msra.mxu1 %v1920_v30 }
 0x338   :  { %720 = vmatprep.subr.bf16.mxu0 %v1819_v13  ;;  %761 = vmatprep.subr.bf16.mxu1 %v1926_v31 }
 0x33b   :  { %721 = vmatpush1.bf16.msra.mxu0 %v1826_v14  ;;  %762 = vmatpush1.bf16.msra.mxu1 %v1932_v32 }
 0x33c   :  { %722 = vmatprep.subr.bf16.mxu0 %v1833_v15  ;;  %763 = vmatprep.subr.bf16.mxu1 %v1938_v33 }
 0x33f   :  { %723 = vmatpush1.bf16.msra.mxu0 %v1840_v16  ;;  %764 = vmatpush1.bf16.msra.mxu1 %v1944_v34 }
 0x340   :  { %828 = vmatprep.subr.bf16.mxu0 %v1736_v0  ;;  %869 = vmatprep.subr.bf16.mxu1 %v1850_v18 }
 0x3e2   :  { %v622_v52 = vpop.f32.mrf.mxu0  ;;  %v663_v53 = vpop.f32.mrf.mxu1 }
 0x3e3   :  { %v670_v55 = vadd.f32 %v1406_v41, %v622_v52  ;;  %v672_v36 = vadd.f32 %v1408_v19, %v663_v53 }
 0x3e4   :  { %v624_v56 = vpop.f32.mrf.mxu0  ;;  %v665_v57 = vpop.f32.mrf.mxu1 }
 0x3e5   :  { %v1410_v58 = vmul.f32 -1.442695, %v670_v55  ;;  %v671_v59 = vadd.f32 %v1407_v54, %v624_v56  ;;  %v1412_v39 = vmul.f32 -1.442695, %v672_v36  ;;  %v673_v42 = vadd.f32 %v1409_v37, %v665_v57 }
 0x3e6   :  { %v626_v60 = vpop.f32.mrf.mxu0  ;;  %v667_v61 = vpop.f32.mrf.mxu1 }
 0x3e7   :  { %1591 = vpow2.f32 %v1410_v58  ;;  %v1411_v62 = vmul.f32 -1.442695, %v671_v59  ;;  %v1414_v61 = vld [vmem:[%s2421_s0 + $0x88] sm:$0xff] }
 0x3e8   :  { %v627_v63 = vpop.f32.mrf.mxu0  ;;  %v668_v17 = vpop.f32.mrf.mxu1 }
 0x3e9   :  { %1593 = vpow2.f32 %v1411_v62 }
 0x3ea   :  { %1595 = vpow2.f32 %v1412_v39 }
 0x3f4   :  { %v1592_v40 = vpop.eup %1591 }
 0x3f5   :  { %v683_v43 = vadd.f32 1.0, %v1592_v40 }
 0x3f6   :  { %v1594_v45 = vpop.eup %1593 }
 0x3f7   :  { %1597 = vrcp.f32 %v683_v43  ;;  %v684_v35 = vadd.f32 1.0, %v1594_v45  ;;  %v1596_v46 = vpop.eup %1595  ;;  %v1415_v43 = vld [vmem:[%s2421_s0 + $0x90] sm:$0xff] }
 0x3f8   :  { %1599 = vtanh.f32 %v673_v42  ;;  %v685_v41 = vadd.f32 1.0, %v1596_v46 }
 0x3f9   :  { %1601 = vrcp.f32 %v684_v35  ;;  %v1416_v35 = vld [vmem:[%s2421_s0 + $0x98] sm:$0xff] }
 0x3fa   :  { %1603 = vrcp.f32 %v685_v41 }
 0x404   :  { %v1598_v48 = vpop.eup %1597 }
 0x405   :  { %v1600_v49 = vpop.eup %1599 }
 0x406   :  { %v1602_v51 = vpop.eup %1601  ;;  %v694_v53 = vmul.f32 %v1600_v49, %v1598_v48 }
 0x407   :  { %v693_v52 = vmul.f32 %v1602_v51, %v2089_v47  ;;  %v1604_v55 = vpop.eup %1603  ;;  %v1413_v47 = vld [vmem:[%s2421_s0 + $0x80] sm:$0xff] }
 0x409   :  { %v2143_v54 = vadd.f32 %v694_v53, %v693_v52 }
 0x40b   :  { %1605 = vtanh.f32 %v2143_v54 }
 0x418   :  { %v1606_v56 = vpop.eup %1605 }
 0x419   :  { %v2146_v57 = vmul.f32 %v1606_v56, %v1604_v55 }
 0x41b   :  { %v707_v58 = vpack.c.bf16 %v2146_v57, %v2146_v57 }
 0x41d   :  { %741 = vmatmul.mubr.bf16.vlgmr.msra.gmra.mxu0 %v707_v58  ;;  %782 = vmatmul.mubr.bf16.vlgmr.msra.gmra.mxu1 %v707_v58 }
 0x41e   :  { %829 = vmatpush1.bf16.msra.mxu0 %v1743_v2  ;;  %870 = vmatpush1.bf16.msra.mxu1 %v1857_v20 }
 0x41f   :  { %830 = vmatprep.subr.bf16.mxu0 %v1749_v3  ;;  %871 = vmatprep.subr.bf16.mxu1 %v1864_v21 }
 0x420   :  { %860 = vmatprep.mubr.bf16.mxu0 %v1687_v1  ;;  %901 = vmatprep.mubr.bf16.mxu1 %v1687_v1 }
 0x422   :  { %831 = vmatpush1.bf16.msra.mxu0 %v1756_v4  ;;  %872 = vmatpush1.bf16.msra.mxu1 %v1871_v22 }
 0x423   :  { %832 = vmatprep.subr.bf16.mxu0 %v1763_v5  ;;  %873 = vmatprep.subr.bf16.mxu1 %v1878_v23 }
 0x426   :  { %833 = vmatpush1.bf16.msra.mxu0 %v1770_v6  ;;  %874 = vmatpush1.bf16.msra.mxu1 %v1884_v24 }
 0x427   :  { %834 = vmatprep.subr.bf16.mxu0 %v1777_v7  ;;  %875 = vmatprep.subr.bf16.mxu1 %v1890_v25 }
 0x42a   :  { %835 = vmatpush1.bf16.msra.mxu0 %v1784_v8  ;;  %876 = vmatpush1.bf16.msra.mxu1 %v1896_v26 }
 0x42b   :  { %836 = vmatprep.subr.bf16.mxu0 %v1791_v9  ;;  %877 = vmatprep.subr.bf16.mxu1 %v1902_v27 }
 0x42e   :  { %837 = vmatpush1.bf16.msra.mxu0 %v1798_v10  ;;  %878 = vmatpush1.bf16.msra.mxu1 %v1908_v28 }
 0x42f   :  { %838 = vmatprep.subr.bf16.mxu0 %v1805_v11  ;;  %879 = vmatprep.subr.bf16.mxu1 %v1914_v29 }
 0x432   :  { %839 = vmatpush1.bf16.msra.mxu0 %v1812_v12  ;;  %880 = vmatpush1.bf16.msra.mxu1 %v1920_v30 }
 0x433   :  { %840 = vmatprep.subr.bf16.mxu0 %v1819_v13  ;;  %881 = vmatprep.subr.bf16.mxu1 %v1926_v31 }
 0x436   :  { %841 = vmatpush1.bf16.msra.mxu0 %v1826_v14  ;;  %882 = vmatpush1.bf16.msra.mxu1 %v1932_v32 }
 0x437   :  { %842 = vmatprep.subr.bf16.mxu0 %v1833_v15  ;;  %883 = vmatprep.subr.bf16.mxu1 %v1938_v33 }
 0x43a   :  { %843 = vmatpush1.bf16.msra.mxu0 %v1840_v16  ;;  %884 = vmatpush1.bf16.msra.mxu1 %v1944_v34 }
 0x43b   :  { %948 = vmatprep.subr.bf16.mxu0 %v1736_v0  ;;  %989 = vmatprep.subr.bf16.mxu1 %v1850_v18 }
 0x4dd   :  { %v742_v59 = vpop.f32.mrf.mxu0  ;;  %v783_v60 = vpop.f32.mrf.mxu1 }
 0x4de   :  { %v790_v62 = vadd.f32 %v1413_v47, %v742_v59  ;;  %v792_v45 = vadd.f32 %v1415_v43, %v783_v60 }
 0x4df   :  { %v744_v63 = vpop.f32.mrf.mxu0  ;;  %v785_v17 = vpop.f32.mrf.mxu1 }
 0x4e0   :  { %v1417_v19 = vmul.f32 -1.442695, %v790_v62  ;;  %v791_v36 = vadd.f32 %v1414_v61, %v744_v63  ;;  %v1419_v46 = vmul.f32 -1.442695, %v792_v45  ;;  %v793_v49 = vadd.f32 %v1416_v35, %v785_v17 }
 0x4e1   :  { %v746_v37 = vpop.f32.mrf.mxu0  ;;  %v787_v39 = vpop.f32.mrf.mxu1 }
 0x4e2   :  { %1607 = vpow2.f32 %v1417_v19  ;;  %v1418_v0 = vmul.f32 -1.442695, %v791_v36  ;;  %v1423_v36 = vld [vmem:[%s2421_s0 + $0xb8] sm:$0xff] }
 0x4e3   :  { %v747_v40 = vpop.f32.mrf.mxu0  ;;  %v788_v42 = vpop.f32.mrf.mxu1 }
 0x4e4   :  { %1609 = vpow2.f32 %v1418_v0 }
 0x4e5   :  { %1611 = vpow2.f32 %v1419_v46 }
 0x4ef   :  { %v1608_v48 = vpop.eup %1607 }
 0x4f0   :  { %v803_v51 = vadd.f32 1.0, %v1608_v48 }
 0x4f1   :  { %v1610_v41 = vpop.eup %1609 }
 0x4f2   :  { %1613 = vrcp.f32 %v803_v51  ;;  %v804_v52 = vadd.f32 1.0, %v1610_v41  ;;  %v1612_v53 = vpop.eup %1611 }
 0x4f3   :  { %1615 = vtanh.f32 %v793_v49  ;;  %v805_v47 = vadd.f32 1.0, %v1612_v53 }
 0x4f4   :  { %1617 = vrcp.f32 %v804_v52 }
 0x4f5   :  { %1619 = vrcp.f32 %v805_v47  ;;  %v1672_v47 = vld [vmem:[%s2419_s1 + $0xe0] ss:$16 sps:$4 sm:$0xff]  }
 0x4ff   :  { %v1614_v55 = vpop.eup %1613 }
 0x500   :  { %v1616_v56 = vpop.eup %1615 }
 0x501   :  { %v1618_v58 = vpop.eup %1617  ;;  %v814_v60 = vmul.f32 %v1616_v56, %v1614_v55 }
 0x502   :  { %v813_v59 = vmul.f32 %v1618_v58, %v2143_v54  ;;  %v1620_v62 = vpop.eup %1619 }
 0x504   :  { %v2197_v61 = vadd.f32 %v814_v60, %v813_v59  ;;  %v1673_v59 = vld [vmem:[%s2419_s1 + $0xc4] ss:$16 sps:$4 sm:$0xff]   ;;  %v1674_v60 = vld [vmem:[%s2419_s1 + $0xc0] ss:$16 sps:$4 sm:$0xff]  }
 0x506   :  { %1621 = vtanh.f32 %v2197_v61 }
 0x513   :  { %v1622_v63 = vpop.eup %1621 }
 0x514   :  { %v2200_v17 = vmul.f32 %v1622_v63, %v1620_v62 }
 0x516   :  { %v827_v19 = vpack.c.bf16 %v2200_v17, %v2200_v17 }
 0x518   :  { %861 = vmatmul.mubr.bf16.vlgmr.msra.gmra.mxu0 %v827_v19  ;;  %902 = vmatmul.mubr.bf16.vlgmr.msra.gmra.mxu1 %v827_v19 }
 0x519   :  { %949 = vmatpush1.bf16.msra.mxu0 %v1743_v2  ;;  %990 = vmatpush1.bf16.msra.mxu1 %v1857_v20  ;;  %v1671_v2 = vld [vmem:[%s2419_s1 + $0xe4] ss:$16 sps:$4 sm:$0xff]  }
 0x51a   :  { %950 = vmatprep.subr.bf16.mxu0 %v1749_v3  ;;  %991 = vmatprep.subr.bf16.mxu1 %v1864_v21  ;;  %v1420_v3 = vld [vmem:[%s2421_s0 + $0xa0] sm:$0xff] }
 0x51b   :  { %980 = vmatprep.mubr.bf16.mxu0 %v1687_v1  ;;  %1021 = vmatprep.mubr.bf16.mxu1 %v1687_v1 }
 0x51d   :  { %951 = vmatpush1.bf16.msra.mxu0 %v1756_v4  ;;  %992 = vmatpush1.bf16.msra.mxu1 %v1871_v22 }
 0x51e   :  { %952 = vmatprep.subr.bf16.mxu0 %v1763_v5  ;;  %993 = vmatprep.subr.bf16.mxu1 %v1878_v23 }
 0x521   :  { %953 = vmatpush1.bf16.msra.mxu0 %v1770_v6  ;;  %994 = vmatpush1.bf16.msra.mxu1 %v1884_v24  ;;  %v1421_v6 = vld [vmem:[%s2421_s0 + $0xa8] sm:$0xff] }
 0x522   :  { %954 = vmatprep.subr.bf16.mxu0 %v1777_v7  ;;  %995 = vmatprep.subr.bf16.mxu1 %v1890_v25 }
 0x525   :  { %955 = vmatpush1.bf16.msra.mxu0 %v1784_v8  ;;  %996 = vmatpush1.bf16.msra.mxu1 %v1896_v26 }
 0x526   :  { %956 = vmatprep.subr.bf16.mxu0 %v1791_v9  ;;  %997 = vmatprep.subr.bf16.mxu1 %v1902_v27 }
 0x529   :  { %957 = vmatpush1.bf16.msra.mxu0 %v1798_v10  ;;  %998 = vmatpush1.bf16.msra.mxu1 %v1908_v28 }
 0x52a   :  { %958 = vmatprep.subr.bf16.mxu0 %v1805_v11  ;;  %999 = vmatprep.subr.bf16.mxu1 %v1914_v29 }
 0x52d   :  { %959 = vmatpush1.bf16.msra.mxu0 %v1812_v12  ;;  %1000 = vmatpush1.bf16.msra.mxu1 %v1920_v30 }
 0x52e   :  { %960 = vmatprep.subr.bf16.mxu0 %v1819_v13  ;;  %1001 = vmatprep.subr.bf16.mxu1 %v1926_v31 }
 0x531   :  { %961 = vmatpush1.bf16.msra.mxu0 %v1826_v14  ;;  %1002 = vmatpush1.bf16.msra.mxu1 %v1932_v32 }
 0x532   :  { %962 = vmatprep.subr.bf16.mxu0 %v1833_v15  ;;  %1003 = vmatprep.subr.bf16.mxu1 %v1938_v33 }
 0x535   :  { %963 = vmatpush1.bf16.msra.mxu0 %v1840_v16  ;;  %1004 = vmatpush1.bf16.msra.mxu1 %v1944_v34 }
 0x536   :  { %1068 = vmatprep.subr.bf16.mxu0 %v1671_v2  ;;  %1109 = vmatprep.subr.bf16.mxu1 %v1850_v18  ;;  %v1422_v18 = vld [vmem:[%s2421_s0 + $0xb0] sm:$0xff] }
 0x5d8   :  { %v862_v4 = vpop.f32.mrf.mxu0  ;;  %v903_v5 = vpop.f32.mrf.mxu1 }
 0x5d9   :  { %v910_v7 = vadd.f32 %v1420_v3, %v862_v4  ;;  %v912_v54 = vadd.f32 %v1422_v18, %v903_v5 }
 0x5da   :  { %v864_v8 = vpop.f32.mrf.mxu0  ;;  %v905_v9 = vpop.f32.mrf.mxu1 }
 0x5db   :  { %v1424_v10 = vmul.f32 -1.442695, %v910_v7  ;;  %v911_v11 = vadd.f32 %v1421_v6, %v864_v8  ;;  %v1426_v37 = vmul.f32 -1.442695, %v912_v54  ;;  %v913_v0 = vadd.f32 %v1423_v36, %v905_v9  ;;  %v1429_v9 = vld [vmem:[%s2421_s0 + $0xd0] sm:$0xff] }
 0x5dc   :  { %v866_v12 = vpop.f32.mrf.mxu0  ;;  %v907_v13 = vpop.f32.mrf.mxu1 }
 0x5dd   :  { %1623 = vpow2.f32 %v1424_v10  ;;  %v1425_v14 = vmul.f32 -1.442695, %v911_v11  ;;  %v1430_v11 = vld [vmem:[%s2421_s0 + $0xd8] sm:$0xff] }
 0x5de   :  { %v867_v15 = vpop.f32.mrf.mxu0  ;;  %v908_v16 = vpop.f32.mrf.mxu1 }
 0x5df   :  { %1625 = vpow2.f32 %v1425_v14 }
 0x5e0   :  { %1627 = vpow2.f32 %v1426_v37 }
 0x5ea   :  { %v1624_v39 = vpop.eup %1623 }
 0x5eb   :  { %v923_v40 = vadd.f32 1.0, %v1624_v39 }
 0x5ec   :  { %v1626_v42 = vpop.eup %1625 }
 0x5ed   :  { %1629 = vrcp.f32 %v923_v40  ;;  %v924_v43 = vadd.f32 1.0, %v1626_v42  ;;  %v1628_v45 = vpop.eup %1627 }
 0x5ee   :  { %1631 = vtanh.f32 %v913_v0  ;;  %v925_v49 = vadd.f32 1.0, %v1628_v45 }
 0x5ef   :  { %1633 = vrcp.f32 %v924_v43 }
 0x5f0   :  { %1635 = vrcp.f32 %v925_v49  ;;  %v1536_v49 = vld [vmem:[%s2423_s2 + $0x30] sm:$0xff]  }
 0x5fa   :  { %v1630_v35 = vpop.eup %1629 }
 0x5fb   :  { %v1632_v46 = vpop.eup %1631 }
 0x5fc   :  { %v1634_v48 = vpop.eup %1633  ;;  %v934_v41 = vmul.f32 %v1632_v46, %v1630_v35 }
 0x5fd   :  { %v933_v51 = vmul.f32 %v1634_v48, %v2197_v61  ;;  %v1636_v53 = vpop.eup %1635 }
 0x5ff   :  { %v2253_v52 = vadd.f32 %v934_v41, %v933_v51  ;;  %v1190_v51 = vpack.c.bf16 %v2038_v44, %v1984_v38  ;;  %v1537_v41 = vld [vmem:[%s2423_s2 + $0x28] sm:$0xff]   ;;  %v1539_v38 = vld [vmem:[%s2423_s2 + $0x18] sm:$0xff]   ;;  %v1540_v44 = vld [vmem:[%s2423_s2 + $0x10] sm:$0xff]  }
 0x601   :  { %1637 = vtanh.f32 %v2253_v52 }
 0x60e   :  { %v1638_v55 = vpop.eup %1637 }
 0x60f   :  { %v2256_v56 = vmul.f32 %v1638_v55, %v1636_v53  ;;  %v1541_v53 = vld [vmem:[%s2423_s2 + $0x8] sm:$0xff]   ;;  %v1542_v55 = vld [vmem:[%s2423_s2] sm:$0xff]  }
 0x611   :  { %v947_v58 = vpack.c.bf16 %v2256_v56, %v2256_v56 }
 0x613   :  { %981 = vmatmul.mubr.bf16.vlgmr.msra.gmra.mxu0 %v947_v58  ;;  %1022 = vmatmul.mubr.bf16.vlgmr.msra.gmra.mxu1 %v947_v58  ;;  %v1191_v58 = vpack.c.bf16 %v2146_v57, %v2092_v50 }
 0x614   :  { %1069 = vmatpush1.bf16.msra.mxu0 %v1672_v47  ;;  %1110 = vmatpush1.bf16.msra.mxu1 %v1857_v20  ;;  %v1675_v20 = vld [vmem:[%s2419_s1 + $0xa4] ss:$16 sps:$4 sm:$0xff]   ;;  %v1192_v47 = vpack.c.bf16 %v2256_v56, %v2200_v17 }
 0x615   :  { %1070 = vmatprep.subr.bf16.mxu0 %v1673_v59  ;;  %1111 = vmatprep.subr.bf16.mxu1 %v1864_v21  ;;  %v1676_v21 = vld [vmem:[%s2419_s1 + $0xa0] ss:$16 sps:$4 sm:$0xff]  }
 0x616   :  { %1100 = vmatprep.mubr.bf16.mxu0 %v1687_v1  ;;  %1141 = vmatprep.mubr.bf16.mxu1 %v1687_v1  ;;  %v1677_v1 = vld [vmem:[%s2419_s1 + $0x84] ss:$16 sps:$4 sm:$0xff]  }
 0x617   :  { %v1434_v59 = vld [vmem:[%s2421_s0 + $0xe0] sm:$0xff] }
 0x618   :  { %1071 = vmatpush1.bf16.msra.mxu0 %v1674_v60  ;;  %1112 = vmatpush1.bf16.msra.mxu1 %v1871_v22  ;;  %v1678_v22 = vld [vmem:[%s2419_s1 + $0x80] ss:$16 sps:$4 sm:$0xff]  }
 0x619   :  { %1072 = vmatprep.subr.bf16.mxu0 %v1675_v20  ;;  %1113 = vmatprep.subr.bf16.mxu1 %v1878_v23  ;;  %v1679_v23 = vld [vmem:[%s2419_s1 + $0x64] ss:$16 sps:$4 sm:$0xff]  }
 0x61c   :  { %1073 = vmatpush1.bf16.msra.mxu0 %v1676_v21  ;;  %1114 = vmatpush1.bf16.msra.mxu1 %v1884_v24  ;;  %v1680_v24 = vld [vmem:[%s2419_s1 + $0x60] ss:$16 sps:$4 sm:$0xff]   ;;  %v1435_v21 = vld [vmem:[%s2421_s0 + $0xe8] sm:$0xff] }
 0x61d   :  { %1074 = vmatprep.subr.bf16.mxu0 %v1677_v1  ;;  %1115 = vmatprep.subr.bf16.mxu1 %v1890_v25  ;;  %v1681_v25 = vld [vmem:[%s2419_s1 + $0x44] ss:$16 sps:$4 sm:$0xff]  }
 0x620   :  { %1075 = vmatpush1.bf16.msra.mxu0 %v1678_v22  ;;  %1116 = vmatpush1.bf16.msra.mxu1 %v1896_v26  ;;  %v1682_v26 = vld [vmem:[%s2419_s1 + $0x40] ss:$16 sps:$4 sm:$0xff]  }
 0x621   :  { %1076 = vmatprep.subr.bf16.mxu0 %v1679_v23  ;;  %1117 = vmatprep.subr.bf16.mxu1 %v1902_v27  ;;  %v1683_v27 = vld [vmem:[%s2419_s1 + $0x24] ss:$16 sps:$4 sm:$0xff]  }
 0x624   :  { %1077 = vmatpush1.bf16.msra.mxu0 %v1680_v24  ;;  %1118 = vmatpush1.bf16.msra.mxu1 %v1908_v28  ;;  %v1684_v28 = vld [vmem:[%s2419_s1 + $0x20] ss:$16 sps:$4 sm:$0xff]  }
 0x625   :  { %1078 = vmatprep.subr.bf16.mxu0 %v1681_v25  ;;  %1119 = vmatprep.subr.bf16.mxu1 %v1914_v29  ;;  %v1685_v29 = vld [vmem:[%s2419_s1 + $0x4] ss:$16 sps:$4 sm:$0xff]  }
 0x628   :  { %1079 = vmatpush1.bf16.msra.mxu0 %v1682_v26  ;;  %1120 = vmatpush1.bf16.msra.mxu1 %v1920_v30  ;;  %v1686_v30 = vld [vmem:[%s2419_s1] ss:$16 sps:$4 sm:$0xff]  }
 0x629   :  { %1080 = vmatprep.subr.bf16.mxu0 %v1683_v27  ;;  %1121 = vmatprep.subr.bf16.mxu1 %v1926_v31  ;;  %v1535_v31 = vld [vmem:[%s2423_s2 + $0x38] sm:$0xff]   ;;  %v1436_v27 = vld [vmem:[%s2421_s0 + $0xf0] sm:$0xff] }
 0x62c   :  { %1081 = vmatpush1.bf16.msra.mxu0 %v1684_v28  ;;  %1122 = vmatpush1.bf16.msra.mxu1 %v1932_v32  ;;  %v1427_v32 = vld [vmem:[%s2421_s0 + $0xc0] sm:$0xff] }
 0x62d   :  { %1082 = vmatprep.subr.bf16.mxu0 %v1685_v29  ;;  %1123 = vmatprep.subr.bf16.mxu1 %v1938_v33  ;;  %v1428_v33 = vld [vmem:[%s2421_s0 + $0xc8] sm:$0xff]  ;;  %v1437_v29 = vld [vmem:[%s2421_s0 + $0xf8] sm:$0xff] }
 0x630   :  { %1083 = vmatpush1.bf16.msra.mxu0 %v1686_v30  ;;  %1124 = vmatpush1.bf16.msra.mxu1 %v1944_v34 }
 0x631   :  { %1462 = vmatprep.subr.bf16.mxu0 %v1535_v31 }
 0x6d3   :  { %v982_v61 = vpop.f32.mrf.mxu0  ;;  %v1023_v62 = vpop.f32.mrf.mxu1 }
 0x6d4   :  { %v1030_v63 = vadd.f32 %v1427_v32, %v982_v61  ;;  %v1032_v10 = vadd.f32 %v1429_v9, %v1023_v62 }
 0x6d5   :  { %v984_v19 = vpop.f32.mrf.mxu0  ;;  %v1025_v2 = vpop.f32.mrf.mxu1 }
 0x6d6   :  { %v1431_v3 = vmul.f32 -1.442695, %v1030_v63  ;;  %v1031_v34 = vadd.f32 %v1428_v33, %v984_v19  ;;  %v1433_v12 = vmul.f32 -1.442695, %v1032_v10  ;;  %v1033_v14 = vadd.f32 %v1430_v11, %v1025_v2  ;;  %v1441_v63 = vld [vmem:[%s2424_s3] ss:$0 sm:$0xff] }
 0x6d7   :  { %v986_v4 = vpop.f32.mrf.mxu0  ;;  %v1027_v5 = vpop.f32.mrf.mxu1 }
 0x6d8   :  { %1639 = vpow2.f32 %v1431_v3  ;;  %v1432_v6 = vmul.f32 -1.442695, %v1031_v34 }
 0x6d9   :  { %v987_v7 = vpop.f32.mrf.mxu0  ;;  %v1028_v8 = vpop.f32.mrf.mxu1 }
 0x6da   :  { %1641 = vpow2.f32 %v1432_v6 }
 0x6db   :  { %1643 = vpow2.f32 %v1433_v12 }
 0x6e5   :  { %v1640_v13 = vpop.eup %1639 }
 0x6e6   :  { %v1043_v15 = vadd.f32 1.0, %v1640_v13 }
 0x6e7   :  { %v1642_v16 = vpop.eup %1641 }
 0x6e8   :  { %1645 = vrcp.f32 %v1043_v15  ;;  %v1044_v18 = vadd.f32 1.0, %v1642_v16  ;;  %v1644_v54 = vpop.eup %1643 }
 0x6e9   :  { %1647 = vtanh.f32 %v1033_v14  ;;  %v1045_v0 = vadd.f32 1.0, %v1644_v54 }
 0x6ea   :  { %1649 = vrcp.f32 %v1044_v18 }
 0x6eb   :  { %1651 = vrcp.f32 %v1045_v0 }
 0x6f5   :  { %v1646_v36 = vpop.eup %1645 }
 0x6f6   :  { %v1648_v37 = vpop.eup %1647 }
 0x6f7   :  { %v1650_v39 = vpop.eup %1649  ;;  %v1054_v42 = vmul.f32 %v1648_v37, %v1646_v36 }
 0x6f8   :  { %v1053_v40 = vmul.f32 %v1650_v39, %v2253_v52  ;;  %v1652_v45 = vpop.eup %1651  ;;  %v1538_v52 = vld [vmem:[%s2423_s2 + $0x20] sm:$0xff]  }
 0x6fa   :  { %v2338_v43 = vadd.f32 %v1054_v42, %v1053_v40 }
 0x6fc   :  { %1653 = vtanh.f32 %v2338_v43 }
 0x709   :  { %v1654_v35 = vpop.eup %1653 }
 0x70a   :  { %v2341_v46 = vmul.f32 %v1654_v35, %v1652_v45 }
 0x70c   :  { %v1067_v48 = vpack.c.bf16 %v2341_v46, %v2341_v46 }
 0x70e   :  { %1101 = vmatmul.mubr.bf16.vlgmr.msra.gmra.mxu0 %v1067_v48  ;;  %1142 = vmatmul.mubr.bf16.vlgmr.msra.gmra.mxu1 %v1067_v48 }
 0x70f   :  { %1463 = vmatpush3.bf16.msra.mxu0 %v1535_v31  ;;  %1478 = vmatprep.mubr.bf16.mxu0 %v1190_v51 }
 0x710   :  { %1464 = vmatprep.subr.bf16.mxu0 %v1536_v49 }
 0x713   :  { %1465 = vmatpush3.bf16.msra.mxu0 %v1536_v49 }
 0x714   :  { %1466 = vmatprep.subr.bf16.mxu0 %v1537_v41 }
 0x717   :  { %1467 = vmatpush3.bf16.msra.mxu0 %v1537_v41 }
 0x718   :  { %1468 = vmatprep.subr.bf16.mxu0 %v1538_v52 }
 0x71b   :  { %1469 = vmatpush3.bf16.msra.mxu0 %v1538_v52 }
 0x71c   :  { %1470 = vmatprep.subr.bf16.mxu0 %v1539_v38 }
 0x71f   :  { %1471 = vmatpush3.bf16.msra.mxu0 %v1539_v38 }
 0x720   :  { %1472 = vmatprep.subr.bf16.mxu0 %v1540_v44 }
 0x723   :  { %1473 = vmatpush3.bf16.msra.mxu0 %v1540_v44 }
 0x724   :  { %1474 = vmatprep.subr.bf16.mxu0 %v1541_v53 }
 0x727   :  { %1475 = vmatpush3.bf16.msra.mxu0 %v1541_v53 }
 0x728   :  { %1476 = vmatprep.subr.bf16.mxu0 %v1542_v55 }
 0x72b   :  { %1477 = vmatpush3.bf16.msra.mxu0 %v1542_v55 }
 0x72e   :  { %1479 = vmatmul.mubr.bf16.vlgmr.msra.gmra.mxu0 %v1191_v58 }
 0x72f   :  { %1482 = vmatprep.mubr.bf16.mxu0 %v1192_v47 }
 0x7ce   :  { %v1102_v60 = vpop.f32.mrf.mxu0  ;;  %v1143_v20 = vpop.f32.mrf.mxu1 }
 0x7cf   :  { %v1150_v1 = vadd.f32 %v1434_v59, %v1102_v60  ;;  %v1152_v28 = vadd.f32 %v1436_v27, %v1143_v20 }
 0x7d0   :  { %v1104_v22 = vpop.f32.mrf.mxu0  ;;  %v1145_v23 = vpop.f32.mrf.mxu1 }
 0x7d1   :  { %v1438_v24 = vmul.f32 -1.442695, %v1150_v1  ;;  %v1151_v50 = vadd.f32 %v1435_v21, %v1104_v22  ;;  %v1440_v30 = vmul.f32 -1.442695, %v1152_v28  ;;  %v1153_v32 = vadd.f32 %v1437_v29, %v1145_v23 }
 0x7d2   :  { %v1106_v57 = vpop.f32.mrf.mxu0  ;;  %v1147_v25 = vpop.f32.mrf.mxu1 }
 0x7d3   :  { %1655 = vpow2.f32 %v1438_v24  ;;  %v1439_v17 = vmul.f32 -1.442695, %v1151_v50 }
 0x7d4   :  { %v1107_v56 = vpop.f32.mrf.mxu0  ;;  %v1148_v26 = vpop.f32.mrf.mxu1 }
 0x7d5   :  { %1657 = vpow2.f32 %v1439_v17 }
 0x7d6   :  { %1659 = vpow2.f32 %v1440_v30 }
 0x7e0   :  { %v1656_v31 = vpop.eup %1655 }
 0x7e1   :  { %v1163_v61 = vadd.f32 1.0, %v1656_v31 }
 0x7e2   :  { %v1658_v62 = vpop.eup %1657 }
 0x7e3   :  { %1661 = vrcp.f32 %v1163_v61  ;;  %v1164_v33 = vadd.f32 1.0, %v1658_v62  ;;  %v1660_v2 = vpop.eup %1659 }
 0x7e4   :  { %1663 = vtanh.f32 %v1153_v32  ;;  %v1165_v8 = vadd.f32 1.0, %v1660_v2 }
 0x7e5   :  { %1665 = vrcp.f32 %v1164_v33 }
 0x7e6   :  { %1667 = vrcp.f32 %v1165_v8 }
 0x7ee   :  { %v1480_v19 = vpop.f32.mrf.mxu0 }
 0x7ef   :  { %v1308_v3 = vadd.f32 %v1480_v19, %v1441_v63 }
 0x7f0   :  { %v1662_v34 = vpop.eup %1661  ;;  %v1299_v4 = vpop.f32.mrf.mxu0 }
 0x7f1   :  { %v1664_v5 = vpop.eup %1663  ;;  %1332 = vst [vmem:[%s2425_s6 + $0x10] sm:$0xff] %v1308_v3  ;;  %v1300_v6 = vadd.f32 %v1441_v63, %v1299_v4 }
 0x7f2   :  { %v1666_v7 = vpop.eup %1665  ;;  %v1481_v9 = vpop.f32.mrf.mxu0  ;;  %v1174_v11 = vmul.f32 %v1664_v5, %v1662_v34 }
 0x7f3   :  { %v1173_v10 = vmul.f32 %v1666_v7, %v2338_v43  ;;  %1330 = vst [vmem:[%s2425_s6] sm:$0xff] %v1300_v6  ;;  %v1311_v12 = vadd.f32 %v1481_v9, %v1441_v63  ;;  %v1668_v16 = vpop.eup %1667 }
 0x7f4   :  { %v1302_v13 = vpop.f32.mrf.mxu0 }
 0x7f5   :  { %v1175_v14 = vadd.f32 %v1174_v11, %v1173_v10  ;;  %1333 = vst [vmem:[%s2425_s6 + $0x18] sm:$0xff] %v1311_v12  ;;  %v1303_v15 = vadd.f32 %v1441_v63, %v1302_v13 }
 0x7f7   :  { %1669 = vtanh.f32 %v1175_v14  ;;  %1181 = vst [vmem:[%s2426_s8] sm:$0xff] %v1175_v14  ;;  %1331 = vst [vmem:[%s2425_s6 + $0x8] sm:$0xff] %v1303_v15 }
 0x804   :  { %v1670_v18 = vpop.eup %1669 }
 0x805   :  { %v1177_v54 = vmul.f32 %v1670_v18, %v1668_v16 }
 0x807   :  { %1180 = vst [vmem:[%s2427_s7] sm:$0xff] %v1177_v54  ;;  %v1193_v36 = vpack.c.bf16 %v1177_v54, %v2341_v46 }
 0x809   :  { %1483 = vmatmul.mubr.bf16.gmra.mxu0 %v1193_v36 }
 0x8c9   :  { %v1484_v37 = vpop.f32.mrf.mxu0 }
 0x8ca   :  { %v1324_v39 = vadd.f32 %v1484_v37, %v1441_v63 }
 0x8cb   :  { %v1315_v0 = vpop.f32.mrf.mxu0 }
 0x8cc   :  { %1336 = vst [vmem:[%s2425_s6 + $0x30] sm:$0xff] %v1324_v39  ;;  %v1316_v40 = vadd.f32 %v1441_v63, %v1315_v0 }
 0x8cd   :  { %v1485_v42 = vpop.f32.mrf.mxu0 }
 0x8ce   :  { %1334 = vst [vmem:[%s2425_s6 + $0x20] sm:$0xff] %v1316_v40  ;;  %v1327_v43 = vadd.f32 %v1485_v42, %v1441_v63 }
 0x8cf   :  { %v1318_v45 = vpop.f32.mrf.mxu0 }
 0x8d0   :  { %1337 = vst [vmem:[%s2425_s6 + $0x38] sm:$0xff] %v1327_v43  ;;  %v1319_v35 = vadd.f32 %v1441_v63, %v1318_v45 }
 0x8d2   :  { %1335 = vst [vmem:[%s2425_s6 + $0x28] sm:$0xff] %v1319_v35 }

</bundles_post_ra>
